<compile_context>
chip_gen: v5e
topology: v5e:2x2
jax: 0.10.0
libtpu: 0.0.40
codegen_flags: <defaults>
</compile_context>

<pallas_src>
import math
from functools import partial

import jax
import jax.numpy as jnp
from jax.experimental import pallas as pl
from jax.experimental.pallas import tpu as pltpu


_VMEM_LIMIT = 32 * 1024 * 1024  # explicit scoped-VMEM budget, safe on v5e/v6e/v7x


def _pick_tile(n, target=8):
    """Largest divisor of n that is <= target (row-tile size)."""
    t = min(n, target)
    while n % t:
        t -= 1
    return t


def _affine_act(y, scale_ref, bias_ref, relu):
    c = scale_ref.shape[-1]
    y = y * scale_ref[...].reshape(1, 1, c) + bias_ref[...].reshape(1, 1, c)
    if relu:
        y = jnp.maximum(y, 0.0)
    return y


# ---------------------------------------------------------------------------
# Fused GhostModule kernel: 1x1 conv + BN(+ReLU) -> 3x3 depthwise + BN(+ReLU)
# -> channel concat, row-tiled over H.  Grid = (batch, H row tiles).
# ---------------------------------------------------------------------------
def _ghost_kernel(x_ref, pww_ref, pws_ref, pwb_ref, cw_ref, cs_ref, cb_ref,
                  o_ref, x1_pad_ref, *, H, W, TH, init_chn, out_chn, relu):
    t = pl.program_id(1)

    SLAB = min(TH + 2, H)                         # x rows loaded (incl. halo)
    sl_start = jnp.clip(t * TH - 1, 0, H - SLAB)  # first valid x row of slab
    # x1 scratch row r holds x1 of global row (t*TH - 2 + r); rows falling
    # outside the image stay zero => the 3x3 depthwise's 'same' zero padding.
    offset = sl_start - t * TH + 2

    # zero the halo scratch (x1 with a 1-row / 1-col zero border)
    x1_pad_ref[...] = jnp.zeros_like(x1_pad_ref)

    # ---- primary 1x1 conv (+BN +ReLU) on the slab rows ---------------------
    xs = x_ref[0, pl.ds(sl_start, SLAB), :, :]    # (SLAB, W, Cin) f32
    wv = pww_ref[...]                             # (Cin, init_chn)
    cin = wv.shape[0]
    if cin <= 16:
        # tiny channel count: unrolled VPU multiply-add (MXU would be idle)
        x1 = jnp.zeros((SLAB, W, init_chn), jnp.float32)
        for ci in range(cin):
            x1 = x1 + xs[:, :, ci:ci + 1] * wv[ci:ci + 1, :].reshape(1, 1, init_chn)
    else:
        x1 = jnp.dot(xs.reshape(SLAB * W, cin), wv,
                     preferred_element_type=jnp.float32
                     ).reshape(SLAB, W, init_chn)
    x1 = _affine_act(x1, pws_ref, pwb_ref, relu)

    # place x1 into the scratch interior (dynamic row offset, 1-col side pads)
    x1_pad_ref[pl.ds(offset, SLAB), 1:W + 1, :] = x1

    # ---- cheap 3x3 depthwise (+BN +ReLU) on x1, without HBM round trip -----
    # NOTE: for large W the +/-1 column shifts could use pltpu.roll (XLU slot);
    # at W=16 / C<=8 the sliced reads are negligible.
    cw = cw_ref[...]                              # (3, 3, init_chn)
    acc = jnp.zeros((TH, W, init_chn), jnp.float32)
    for ky in range(3):
        for kx in range(3):
            acc = acc + (x1_pad_ref[1 + ky:1 + ky + TH, kx:kx + W, :]
                         * cw[ky:ky + 1, kx:kx + 1, :])
    x2 = _affine_act(acc, cs_ref, cb_ref, relu)

    # ---- concat([x1, x2])[:, :out_chn], single lane-dense store ------------
    x1_c = x1_pad_ref[2:TH + 2, 1:W + 1, :]       # this tile's own x1 rows
    out = jnp.concatenate([x1_c, x2], axis=-1)[:, :, :out_chn]
    o_ref[0] = out.astype(o_ref.dtype)


def ghost_module(x_nhwc, pw_w, pw_scale, pw_bias,
                 cheap_w, cheap_scale, cheap_bias, *, out_chn, relu):
    N, H, W, Cin = x_nhwc.shape
    init_chn = pw_w.shape[1]
    assert out_chn <= 2 * init_chn
    TH = _pick_tile(H, 8)
    kernel = partial(_ghost_kernel, H=H, W=W, TH=TH,
                     init_chn=init_chn, out_chn=out_chn, relu=relu)
    return pl.pallas_call(
        kernel,
        out_shape=jax.ShapeDtypeStruct((N, H, W, out_chn), jnp.float32),
        grid=(N, H // TH),
        in_specs=[
            pl.BlockSpec((1, H, W, Cin), lambda n, t: (n, 0, 0, 0)),
            pl.BlockSpec((Cin, init_chn), lambda n, t: (0, 0)),
            pl.BlockSpec((1, init_chn), lambda n, t: (0, 0)),
            pl.BlockSpec((1, init_chn), lambda n, t: (0, 0)),
            pl.BlockSpec((3, 3, init_chn), lambda n, t: (0, 0, 0)),
            pl.BlockSpec((1, init_chn), lambda n, t: (0, 0)),
            pl.BlockSpec((1, init_chn), lambda n, t: (0, 0)),
        ],
        out_specs=pl.BlockSpec((1, TH, W, out_chn), lambda n, t: (n, t, 0, 0)),
        scratch_shapes=[pltpu.VMEM((TH + 4, W + 2, init_chn), jnp.float32)],
        compiler_params=pltpu.CompilerParams(
            dimension_semantics=("parallel", "parallel"),
            vmem_limit_bytes=_VMEM_LIMIT),
    )(x_nhwc, pw_w, pw_scale.reshape(1, -1), pw_bias.reshape(1, -1),
      cheap_w, cheap_scale.reshape(1, -1), cheap_bias.reshape(1, -1))


# ---------------------------------------------------------------------------
# Strided depthwise KxK conv + BN (no activation), computing only the strided
# output positions directly.  Grid = (batch, output-row tiles).
# ---------------------------------------------------------------------------
def _strided_dw_kernel(y_ref, w_ref, s_ref, b_ref, o_ref, ypad_ref, acc_ref, *,
                       H, W, C, k, stride, pad, Wo, THo):
    t = pl.program_id(1)
    SCR_H = (THo - 1) * stride + k          # padded-input rows needed per tile
    SLAB = min(SCR_H, H)                    # real input rows loaded
    base = t * THo * stride                 # first padded-input row needed
    sl_start = jnp.clip(base - pad, 0, H - SLAB)
    # ypad scratch row r holds padded-input row (base - pad + r); rows outside
    # the image stay zero => the conv's 'same' zero padding.
    offset = sl_start + 2 * pad - base

    ypad_ref[...] = jnp.zeros_like(ypad_ref)
    ypad_ref[pl.ds(offset, SLAB), pad:pad + W, :] = \
        y_ref[0, pl.ds(sl_start, SLAB), :, :]

    # accumulate the k*k taps; H is strided directly (only output rows are
    # produced), W stays at input resolution and is subsampled once below.
    wv = w_ref[...]                          # (k, k, C)
    Wacc = (Wo - 1) * stride + 1
    acc = jnp.zeros((THo, Wacc, C), jnp.float32)
    for ky in range(k):
        for kx in range(k):
            taps = ypad_ref[pl.ds(ky + pad, THo, stride=stride),
                            kx:kx + Wacc, :]
            acc = acc + taps * wv[ky:ky + 1, kx:kx + 1, :]

    acc_ref[...] = acc
    out = acc_ref[:, pl.ds(0, Wo, stride=stride), :]      # W subsample
    c = s_ref.shape[-1]
    out = out * s_ref[...].reshape(1, 1, c) + b_ref[...].reshape(1, 1, c)
    o_ref[0] = out.astype(o_ref.dtype)


def strided_depthwise_bn(y_nhwc, w, scale, bias, *, stride):
    N, H, W, C = y_nhwc.shape
    k = w.shape[0]
    pad = k // 2
    # TODO(synk): for even kernel_size, PyTorch Conv2d(padding=k//2) output
    # indexing should be re-verified against this formulation.
    Ho = (H + 2 * pad - k) // stride + 1
    Wo = (W + 2 * pad - k) // stride + 1
    THo = _pick_tile(Ho, 8)
    SCR_H = (THo - 1) * stride + k
    Wacc = (Wo - 1) * stride + 1
    kernel = partial(_strided_dw_kernel, H=H, W=W, C=C, k=k, stride=stride,
                     pad=pad, Wo=Wo, THo=THo)
    return pl.pallas_call(
        kernel,
        out_shape=jax.ShapeDtypeStruct((N, Ho, Wo, C), jnp.float32),
        grid=(N, Ho // THo),
        in_specs=[
            pl.BlockSpec((1, H, W, C), lambda n, t: (n, 0, 0, 0)),
            pl.BlockSpec((k, k, C), lambda n, t: (0, 0, 0)),
            pl.BlockSpec((1, C), lambda n, t: (0, 0)),
            pl.BlockSpec((1, C), lambda n, t: (0, 0)),
        ],
        out_specs=pl.BlockSpec((1, THo, Wo, C), lambda n, t: (n, t, 0, 0)),
        scratch_shapes=[
            pltpu.VMEM((SCR_H + 2 * pad, W + 2 * pad, C), jnp.float32),
            pltpu.VMEM((THo, Wacc, C), jnp.float32),
        ],
        compiler_params=pltpu.CompilerParams(
            dimension_semantics=("parallel", "parallel"),
            vmem_limit_bytes=_VMEM_LIMIT),
    )(y_nhwc, w, scale.reshape(1, -1), bias.reshape(1, -1))


# ---------------------------------------------------------------------------
# GhostOperation forward (NCHW in / NCHW out, matching the PyTorch module)
# ---------------------------------------------------------------------------
def ghost_operation(x_nchw, params, *, out_chn, stride, relu):
    x = jnp.transpose(x_nchw, (0, 2, 3, 1))           # NCHW -> NHWC
    y = ghost_module(x, params["pw_w"], params["pw_scale"], params["pw_bias"],
                     params["cheap_w"], params["cheap_scale"],
                     params["cheap_bias"], out_chn=out_chn, relu=relu)
    if stride > 1:
        y = strided_depthwise_bn(y, params["dw_w"], params["dw_scale"],
                                 params["dw_bias"], stride=stride)
    return jnp.transpose(y, (0, 3, 1, 2))             # NHWC -> NCHW


# ---------------------------------------------------------------------------
# Deterministic parameter construction + pure-JAX reference for validation
# ---------------------------------------------------------------------------
def _fold_bn(gamma, beta, mean, var, eps=1e-5):
    scale = gamma / jnp.sqrt(var + eps)
    bias = beta - mean * scale
    return scale, bias


def make_params(key, in_chn, out_chn, kernel_size, stride):
    ratio = 2
    init_chn = math.ceil(out_chn / ratio)
    ks = jax.random.split(key, 12)

    def bn(k, c):
        k1, k2, k3, k4 = jax.random.split(k, 4)
        gamma = 0.5 + jax.random.uniform(k1, (c,), jnp.float32)
        beta = 0.1 * jax.random.normal(k2, (c,), jnp.float32)
        mean = 0.1 * jax.random.normal(k3, (c,), jnp.float32)
        var = 0.5 + jax.random.uniform(k4, (c,), jnp.float32)
        return _fold_bn(gamma, beta, mean, var)

    p = {}
    p["pw_w"] = 0.3 * jax.random.normal(ks[0], (in_chn, init_chn), jnp.float32)
    p["pw_scale"], p["pw_bias"] = bn(ks[1], init_chn)
    p["cheap_w"] = 0.3 * jax.random.normal(ks[2], (3, 3, init_chn), jnp.float32)
    p["cheap_scale"], p["cheap_bias"] = bn(ks[3], init_chn)
    if stride > 1:
        p["dw_w"] = 0.3 * jax.random.normal(
            ks[4], (kernel_size, kernel_size, out_chn), jnp.float32)
        p["dw_scale"], p["dw_bias"] = bn(ks[5], out_chn)
    return p, init_chn


def _ref_dw(x, w, stride, pad):
    kh, kw, c = w.shape
    return jax.lax.conv_general_dilated(
        x, w.reshape(kh, kw, 1, c),
        window_strides=(stride, stride),
        padding=[(pad, pad), (pad, pad)],
        dimension_numbers=("NHWC", "HWIO", "NHWC"),
        feature_group_count=c)


def reference(x_nchw, params, *, out_chn, stride, relu):
    x = jnp.transpose(x_nchw, (0, 2, 3, 1))
    cin, cinit = params["pw_w"].shape
    y1 = jax.lax.conv_general_dilated(
        x, params["pw_w"].reshape(1, 1, cin, cinit),
        window_strides=(1, 1), padding=[(0, 0), (0, 0)],
        dimension_numbers=("NHWC", "HWIO", "NHWC"))
    y1 = y1 * params["pw_scale"] + params["pw_bias"]
    if relu:
        y1 = jnp.maximum(y1, 0.0)
    y2 = _ref_dw(y1, params["cheap_w"], 1, 1)
    y2 = y2 * params["cheap_scale"] + params["cheap_bias"]
    if relu:
        y2 = jnp.maximum(y2, 0.0)
    out = jnp.concatenate([y1, y2], axis=-1)[..., :out_chn]
    if stride > 1:
        out = _ref_dw(out, params["dw_w"], stride, params["dw_w"].shape[0] // 2)
        out = out * params["dw_scale"] + params["dw_bias"]
    return jnp.transpose(out, (0, 3, 1, 2))


if __name__ == "__main__":
    key = jax.random.PRNGKey(0)
    kx, kp = jax.random.split(key)

    in_chn, out_chn, kernel_size, stride, relu = 4, 8, 3, 2, True
    x = jax.random.normal(kx, (2, in_chn, 16, 16), jnp.float32)   # NCHW

    # strided config (GhostModule + strided depthwise)
    params, _ = make_params(kp, in_chn, out_chn, kernel_size, stride)
    out = ghost_operation(x, params, out_chn=out_chn, stride=stride, relu=relu)
    out = jax.block_until_ready(out)
    ref = reference(x, params, out_chn=out_chn, stride=stride, relu=relu)
    assert out.shape == (2, out_chn, 8, 8), out.shape
    assert jnp.allclose(out, ref, atol=1e-4, rtol=1e-4), \
        float(jnp.max(jnp.abs(out - ref)))

    # stride=1 config (GhostModule only, exercises just the fused kernel)
    params1, _ = make_params(kp, in_chn, out_chn, kernel_size, 1)
    out1 = ghost_operation(x, params1, out_chn=out_chn, stride=1, relu=relu)
    out1 = jax.block_until_ready(out1)
    ref1 = reference(x, params1, out_chn=out_chn, stride=1, relu=relu)
    assert out1.shape == (2, out_chn, 16, 16), out1.shape
    assert jnp.allclose(out1, ref1, atol=1e-4, rtol=1e-4), \
        float(jnp.max(jnp.abs(out1 - ref1)))

    print("KERNEL_OK")
</pallas_src>

<mosaic_0001>
module attributes {stable_mosaic.version = 11 : i64} {
  func.func @_ghost_kernel(%arg0: i32, %arg1: i32, %arg2: memref<1x16x16x4xf32, #tpu.memory_space<vmem>>, %arg3: memref<4x4xf32, #tpu.memory_space<vmem>>, %arg4: memref<1x4xf32, #tpu.memory_space<vmem>>, %arg5: memref<1x4xf32, #tpu.memory_space<vmem>>, %arg6: memref<3x3x4xf32, #tpu.memory_space<vmem>>, %arg7: memref<1x4xf32, #tpu.memory_space<vmem>>, %arg8: memref<1x4xf32, #tpu.memory_space<vmem>>, %arg9: memref<1x8x16x8xf32, #tpu.memory_space<vmem>>, %arg10: memref<12x18x4xf32, #tpu.memory_space<vmem>>) attributes {dimension_semantics = [#tpu.dimension_semantics<parallel>, #tpu.dimension_semantics<parallel>], iteration_bounds = array<i64: 2, 2>, scalar_prefetch = 0 : i64, scratch_operands = 1 : i64, tpu.core_type = #tpu.core_type<tc>, window_params = [{transform_indices = @transform_0, window_bounds = array<i64: 1, 16, 16, 4>}, {pipeline_mode = #tpu.pipeline_mode<synchronous>, transform_indices = @transform_1, window_bounds = array<i64: 4, 4>}, {pipeline_mode = #tpu.pipeline_mode<synchronous>, transform_indices = @transform_2, window_bounds = array<i64: 1, 4>}, {pipeline_mode = #tpu.pipeline_mode<synchronous>, transform_indices = @transform_3, window_bounds = array<i64: 1, 4>}, {pipeline_mode = #tpu.pipeline_mode<synchronous>, transform_indices = @transform_4, window_bounds = array<i64: 3, 3, 4>}, {pipeline_mode = #tpu.pipeline_mode<synchronous>, transform_indices = @transform_5, window_bounds = array<i64: 1, 4>}, {pipeline_mode = #tpu.pipeline_mode<synchronous>, transform_indices = @transform_6, window_bounds = array<i64: 1, 4>}, {transform_indices = @transform_7, window_bounds = array<i64: 1, 8, 16, 8>}]} {
    %c8_i32 = arith.constant 8 : i32
    %0 = arith.muli %arg1, %c8_i32 : i32
    %c1_i32 = arith.constant 1 : i32
    %1 = arith.subi %0, %c1_i32 : i32
    %c0_i32 = arith.constant 0 : i32
    %c6_i32 = arith.constant 6 : i32
    %2 = arith.maxsi %c0_i32, %1 : i32
    %3 = arith.minsi %c6_i32, %2 : i32
    %c8_i32_0 = arith.constant 8 : i32
    %4 = arith.muli %arg1, %c8_i32_0 : i32
    %5 = arith.subi %3, %4 : i32
    %c2_i32 = arith.constant 2 : i32
    %6 = arith.addi %5, %c2_i32 : i32
    %cst = arith.constant 0.000000e+00 : f32
    %7 = vector.broadcast %cst : f32 to vector<12x18x4xf32>
    %c0 = arith.constant 0 : index
    %c0_1 = arith.constant 0 : index
    %c0_2 = arith.constant 0 : index
    %8 = vector.load %arg10[%c0, %c0_1, %c0_2] : memref<12x18x4xf32, #tpu.memory_space<vmem>>, vector<12x18x4xf32>
    tpu.vector_store %arg10[%c0, %c0_1, %c0_2], %7 {strides = array<i32>} : memref<12x18x4xf32, #tpu.memory_space<vmem>>, vector<12x18x4xf32>,
    %c0_3 = arith.constant 0 : index
    %9 = arith.index_cast %3 : i32 to index
    %c0_4 = arith.constant 0 : index
    %c0_5 = arith.constant 0 : index
    %10 = vector.load %arg2[%c0_3, %9, %c0_4, %c0_5] : memref<1x16x16x4xf32, #tpu.memory_space<vmem>>, vector<1x10x16x4xf32>
    %11 = vector.shape_cast %10 : vector<1x10x16x4xf32> to vector<10x16x4xf32>
    %c0_6 = arith.constant 0 : index
    %c0_7 = arith.constant 0 : index
    %12 = vector.load %arg3[%c0_6, %c0_7] : memref<4x4xf32, #tpu.memory_space<vmem>>, vector<4x4xf32>
    %cst_8 = arith.constant 0.000000e+00 : f32
    %13 = vector.broadcast %cst_8 : f32 to vector<10x16x4xf32>
    %14 = vector.extract_strided_slice %11 {offsets = [0, 0, 0], sizes = [10, 16, 1], strides = [1, 1, 1]} : vector<10x16x4xf32> to vector<10x16x1xf32>
    %15 = vector.extract_strided_slice %12 {offsets = [0, 0], sizes = [1, 4], strides = [1, 1]} : vector<4x4xf32> to vector<1x4xf32>
    %16 = vector.shape_cast %15 : vector<1x4xf32> to vector<1x1x4xf32>
    %17 = vector.broadcast %14 : vector<10x16x1xf32> to vector<10x16x4xf32>
    %18 = vector.broadcast %16 : vector<1x1x4xf32> to vector<10x16x4xf32>
    %19 = arith.mulf %17, %18 : vector<10x16x4xf32>
    %20 = arith.addf %13, %19 : vector<10x16x4xf32>
    %21 = vector.extract_strided_slice %11 {offsets = [0, 0, 1], sizes = [10, 16, 1], strides = [1, 1, 1]} : vector<10x16x4xf32> to vector<10x16x1xf32>
    %22 = vector.extract_strided_slice %12 {offsets = [1, 0], sizes = [1, 4], strides = [1, 1]} : vector<4x4xf32> to vector<1x4xf32>
    %23 = vector.shape_cast %22 : vector<1x4xf32> to vector<1x1x4xf32>
    %24 = vector.broadcast %21 : vector<10x16x1xf32> to vector<10x16x4xf32>
    %25 = vector.broadcast %23 : vector<1x1x4xf32> to vector<10x16x4xf32>
    %26 = arith.mulf %24, %25 : vector<10x16x4xf32>
    %27 = arith.addf %20, %26 : vector<10x16x4xf32>
    %28 = vector.extract_strided_slice %11 {offsets = [0, 0, 2], sizes = [10, 16, 1], strides = [1, 1, 1]} : vector<10x16x4xf32> to vector<10x16x1xf32>
    %29 = vector.extract_strided_slice %12 {offsets = [2, 0], sizes = [1, 4], strides = [1, 1]} : vector<4x4xf32> to vector<1x4xf32>
    %30 = vector.shape_cast %29 : vector<1x4xf32> to vector<1x1x4xf32>
    %31 = vector.broadcast %28 : vector<10x16x1xf32> to vector<10x16x4xf32>
    %32 = vector.broadcast %30 : vector<1x1x4xf32> to vector<10x16x4xf32>
    %33 = arith.mulf %31, %32 : vector<10x16x4xf32>
    %34 = arith.addf %27, %33 : vector<10x16x4xf32>
    %35 = vector.extract_strided_slice %11 {offsets = [0, 0, 3], sizes = [10, 16, 1], strides = [1, 1, 1]} : vector<10x16x4xf32> to vector<10x16x1xf32>
    %36 = vector.extract_strided_slice %12 {offsets = [3, 0], sizes = [1, 4], strides = [1, 1]} : vector<4x4xf32> to vector<1x4xf32>
    %37 = vector.shape_cast %36 : vector<1x4xf32> to vector<1x1x4xf32>
    %38 = vector.broadcast %35 : vector<10x16x1xf32> to vector<10x16x4xf32>
    %39 = vector.broadcast %37 : vector<1x1x4xf32> to vector<10x16x4xf32>
    %40 = arith.mulf %38, %39 : vector<10x16x4xf32>
    %41 = arith.addf %34, %40 : vector<10x16x4xf32>
    %c0_9 = arith.constant 0 : index
    %c0_10 = arith.constant 0 : index
    %42 = vector.load %arg4[%c0_9, %c0_10] : memref<1x4xf32, #tpu.memory_space<vmem>>, vector<1x4xf32>
    %43 = vector.shape_cast %42 : vector<1x4xf32> to vector<1x1x4xf32>
    %44 = vector.broadcast %43 : vector<1x1x4xf32> to vector<10x16x4xf32>
    %45 = arith.mulf %41, %44 : vector<10x16x4xf32>
    %c0_11 = arith.constant 0 : index
    %c0_12 = arith.constant 0 : index
    %46 = vector.load %arg5[%c0_11, %c0_12] : memref<1x4xf32, #tpu.memory_space<vmem>>, vector<1x4xf32>
    %47 = vector.shape_cast %46 : vector<1x4xf32> to vector<1x1x4xf32>
    %48 = vector.broadcast %47 : vector<1x1x4xf32> to vector<10x16x4xf32>
    %49 = arith.addf %45, %48 : vector<10x16x4xf32>
    %cst_13 = arith.constant 0.000000e+00 : f32
    %50 = vector.broadcast %cst_13 : f32 to vector<10x16x4xf32>
    %51 = arith.maximumf %49, %50 : vector<10x16x4xf32>
    %52 = arith.index_cast %6 : i32 to index
    %c1 = arith.constant 1 : index
    %c0_14 = arith.constant 0 : index
    %53 = vector.load %arg10[%52, %c1, %c0_14] : memref<12x18x4xf32, #tpu.memory_space<vmem>>, vector<10x16x4xf32>
    tpu.vector_store %arg10[%52, %c1, %c0_14], %51 {strides = array<i32>} : memref<12x18x4xf32, #tpu.memory_space<vmem>>, vector<10x16x4xf32>,
    %c0_15 = arith.constant 0 : index
    %c0_16 = arith.constant 0 : index
    %c0_17 = arith.constant 0 : index
    %54 = vector.load %arg6[%c0_15, %c0_16, %c0_17] : memref<3x3x4xf32, #tpu.memory_space<vmem>>, vector<3x3x4xf32>
    %cst_18 = arith.constant 0.000000e+00 : f32
    %55 = vector.broadcast %cst_18 : f32 to vector<8x16x4xf32>
    %c1_19 = arith.constant 1 : index
    %c0_20 = arith.constant 0 : index
    %c0_21 = arith.constant 0 : index
    %56 = vector.load %arg10[%c1_19, %c0_20, %c0_21] : memref<12x18x4xf32, #tpu.memory_space<vmem>>, vector<8x16x4xf32>
    %57 = vector.extract_strided_slice %54 {offsets = [0, 0, 0], sizes = [1, 1, 4], strides = [1, 1, 1]} : vector<3x3x4xf32> to vector<1x1x4xf32>
    %58 = vector.broadcast %57 : vector<1x1x4xf32> to vector<8x16x4xf32>
    %59 = arith.mulf %56, %58 : vector<8x16x4xf32>
    %60 = arith.addf %55, %59 : vector<8x16x4xf32>
    %c1_22 = arith.constant 1 : index
    %c1_23 = arith.constant 1 : index
    %c0_24 = arith.constant 0 : index
    %61 = vector.load %arg10[%c1_22, %c1_23, %c0_24] : memref<12x18x4xf32, #tpu.memory_space<vmem>>, vector<8x16x4xf32>
    %62 = vector.extract_strided_slice %54 {offsets = [0, 1, 0], sizes = [1, 1, 4], strides = [1, 1, 1]} : vector<3x3x4xf32> to vector<1x1x4xf32>
    %63 = vector.broadcast %62 : vector<1x1x4xf32> to vector<8x16x4xf32>
    %64 = arith.mulf %61, %63 : vector<8x16x4xf32>
    %65 = arith.addf %60, %64 : vector<8x16x4xf32>
    %c1_25 = arith.constant 1 : index
    %c2 = arith.constant 2 : index
    %c0_26 = arith.constant 0 : index
    %66 = vector.load %arg10[%c1_25, %c2, %c0_26] : memref<12x18x4xf32, #tpu.memory_space<vmem>>, vector<8x16x4xf32>
    %67 = vector.extract_strided_slice %54 {offsets = [0, 2, 0], sizes = [1, 1, 4], strides = [1, 1, 1]} : vector<3x3x4xf32> to vector<1x1x4xf32>
    %68 = vector.broadcast %67 : vector<1x1x4xf32> to vector<8x16x4xf32>
    %69 = arith.mulf %66, %68 : vector<8x16x4xf32>
    %70 = arith.addf %65, %69 : vector<8x16x4xf32>
    %c2_27 = arith.constant 2 : index
    %c0_28 = arith.constant 0 : index
    %c0_29 = arith.constant 0 : index
    %71 = vector.load %arg10[%c2_27, %c0_28, %c0_29] : memref<12x18x4xf32, #tpu.memory_space<vmem>>, vector<8x16x4xf32>
    %72 = vector.extract_strided_slice %54 {offsets = [1, 0, 0], sizes = [1, 1, 4], strides = [1, 1, 1]} : vector<3x3x4xf32> to vector<1x1x4xf32>
    %73 = vector.broadcast %72 : vector<1x1x4xf32> to vector<8x16x4xf32>
    %74 = arith.mulf %71, %73 : vector<8x16x4xf32>
    %75 = arith.addf %70, %74 : vector<8x16x4xf32>
    %c2_30 = arith.constant 2 : index
    %c1_31 = arith.constant 1 : index
    %c0_32 = arith.constant 0 : index
    %76 = vector.load %arg10[%c2_30, %c1_31, %c0_32] : memref<12x18x4xf32, #tpu.memory_space<vmem>>, vector<8x16x4xf32>
    %77 = vector.extract_strided_slice %54 {offsets = [1, 1, 0], sizes = [1, 1, 4], strides = [1, 1, 1]} : vector<3x3x4xf32> to vector<1x1x4xf32>
    %78 = vector.broadcast %77 : vector<1x1x4xf32> to vector<8x16x4xf32>
    %79 = arith.mulf %76, %78 : vector<8x16x4xf32>
    %80 = arith.addf %75, %79 : vector<8x16x4xf32>
    %c2_33 = arith.constant 2 : index
    %c2_34 = arith.constant 2 : index
    %c0_35 = arith.constant 0 : index
    %81 = vector.load %arg10[%c2_33, %c2_34, %c0_35] : memref<12x18x4xf32, #tpu.memory_space<vmem>>, vector<8x16x4xf32>
    %82 = vector.extract_strided_slice %54 {offsets = [1, 2, 0], sizes = [1, 1, 4], strides = [1, 1, 1]} : vector<3x3x4xf32> to vector<1x1x4xf32>
    %83 = vector.broadcast %82 : vector<1x1x4xf32> to vector<8x16x4xf32>
    %84 = arith.mulf %81, %83 : vector<8x16x4xf32>
    %85 = arith.addf %80, %84 : vector<8x16x4xf32>
    %c3 = arith.constant 3 : index
    %c0_36 = arith.constant 0 : index
    %c0_37 = arith.constant 0 : index
    %86 = vector.load %arg10[%c3, %c0_36, %c0_37] : memref<12x18x4xf32, #tpu.memory_space<vmem>>, vector<8x16x4xf32>
    %87 = vector.extract_strided_slice %54 {offsets = [2, 0, 0], sizes = [1, 1, 4], strides = [1, 1, 1]} : vector<3x3x4xf32> to vector<1x1x4xf32>
    %88 = vector.broadcast %87 : vector<1x1x4xf32> to vector<8x16x4xf32>
    %89 = arith.mulf %86, %88 : vector<8x16x4xf32>
    %90 = arith.addf %85, %89 : vector<8x16x4xf32>
    %c3_38 = arith.constant 3 : index
    %c1_39 = arith.constant 1 : index
    %c0_40 = arith.constant 0 : index
    %91 = vector.load %arg10[%c3_38, %c1_39, %c0_40] : memref<12x18x4xf32, #tpu.memory_space<vmem>>, vector<8x16x4xf32>
    %92 = vector.extract_strided_slice %54 {offsets = [2, 1, 0], sizes = [1, 1, 4], strides = [1, 1, 1]} : vector<3x3x4xf32> to vector<1x1x4xf32>
    %93 = vector.broadcast %92 : vector<1x1x4xf32> to vector<8x16x4xf32>
    %94 = arith.mulf %91, %93 : vector<8x16x4xf32>
    %95 = arith.addf %90, %94 : vector<8x16x4xf32>
    %c3_41 = arith.constant 3 : index
    %c2_42 = arith.constant 2 : index
    %c0_43 = arith.constant 0 : index
    %96 = vector.load %arg10[%c3_41, %c2_42, %c0_43] : memref<12x18x4xf32, #tpu.memory_space<vmem>>, vector<8x16x4xf32>
    %97 = vector.extract_strided_slice %54 {offsets = [2, 2, 0], sizes = [1, 1, 4], strides = [1, 1, 1]} : vector<3x3x4xf32> to vector<1x1x4xf32>
    %98 = vector.broadcast %97 : vector<1x1x4xf32> to vector<8x16x4xf32>
    %99 = arith.mulf %96, %98 : vector<8x16x4xf32>
    %100 = arith.addf %95, %99 : vector<8x16x4xf32>
    %c0_44 = arith.constant 0 : index
    %c0_45 = arith.constant 0 : index
    %101 = vector.load %arg7[%c0_44, %c0_45] : memref<1x4xf32, #tpu.memory_space<vmem>>, vector<1x4xf32>
    %102 = vector.shape_cast %101 : vector<1x4xf32> to vector<1x1x4xf32>
    %103 = vector.broadcast %102 : vector<1x1x4xf32> to vector<8x16x4xf32>
    %104 = arith.mulf %100, %103 : vector<8x16x4xf32>
    %c0_46 = arith.constant 0 : index
    %c0_47 = arith.constant 0 : index
    %105 = vector.load %arg8[%c0_46, %c0_47] : memref<1x4xf32, #tpu.memory_space<vmem>>, vector<1x4xf32>
    %106 = vector.shape_cast %105 : vector<1x4xf32> to vector<1x1x4xf32>
    %107 = vector.broadcast %106 : vector<1x1x4xf32> to vector<8x16x4xf32>
    %108 = arith.addf %104, %107 : vector<8x16x4xf32>
    %cst_48 = arith.constant 0.000000e+00 : f32
    %109 = vector.broadcast %cst_48 : f32 to vector<8x16x4xf32>
    %110 = arith.maximumf %108, %109 : vector<8x16x4xf32>
    %c2_49 = arith.constant 2 : index
    %c1_50 = arith.constant 1 : index
    %c0_51 = arith.constant 0 : index
    %111 = vector.load %arg10[%c2_49, %c1_50, %c0_51] : memref<12x18x4xf32, #tpu.memory_space<vmem>>, vector<8x16x4xf32>
    %112 = tpu.concatenate %111, %110 in 2 : vector<8x16x4xf32>, vector<8x16x4xf32> -> vector<8x16x8xf32>
    %c0_52 = arith.constant 0 : index
    %c0_53 = arith.constant 0 : index
    %c0_54 = arith.constant 0 : index
    %c0_55 = arith.constant 0 : index
    %113 = vector.load %arg9[%c0_52, %c0_53, %c0_54, %c0_55] : memref<1x8x16x8xf32, #tpu.memory_space<vmem>>, vector<1x8x16x8xf32>
    %114 = vector.shape_cast %113 : vector<1x8x16x8xf32> to vector<8x16x8xf32>
    %115 = vector.shape_cast %112 : vector<8x16x8xf32> to vector<1x8x16x8xf32>
    tpu.vector_store %arg9[%c0_52, %c0_53, %c0_54, %c0_55], %115 {strides = array<i32>} : memref<1x8x16x8xf32, #tpu.memory_space<vmem>>, vector<1x8x16x8xf32>,
    return
  }
  func.func @transform_0(%arg0: i32, %arg1: i32) -> (i32, i32, i32, i32) {
    %c0_i32 = arith.constant 0 : i32
    %c0_i32_0 = arith.constant 0 : i32
    %c0_i32_1 = arith.constant 0 : i32
    %c0_i32_2 = arith.constant 0 : i32
    return %arg0, %c0_i32, %c0_i32_0, %c0_i32_1 : i32, i32, i32, i32
  }
  func.func @transform_1(%arg0: i32, %arg1: i32) -> (i32, i32) {
    %c0_i32 = arith.constant 0 : i32
    %c0_i32_0 = arith.constant 0 : i32
    %c0_i32_1 = arith.constant 0 : i32
    return %c0_i32, %c0_i32_0 : i32, i32
  }
  func.func @transform_2(%arg0: i32, %arg1: i32) -> (i32, i32) {
    %c0_i32 = arith.constant 0 : i32
    %c0_i32_0 = arith.constant 0 : i32
    %c0_i32_1 = arith.constant 0 : i32
    return %c0_i32, %c0_i32_0 : i32, i32
  }
  func.func @transform_3(%arg0: i32, %arg1: i32) -> (i32, i32) {
    %c0_i32 = arith.constant 0 : i32
    %c0_i32_0 = arith.constant 0 : i32
    %c0_i32_1 = arith.constant 0 : i32
    return %c0_i32, %c0_i32_0 : i32, i32
  }
  func.func @transform_4(%arg0: i32, %arg1: i32) -> (i32, i32, i32) {
    %c0_i32 = arith.constant 0 : i32
    %c0_i32_0 = arith.constant 0 : i32
    %c0_i32_1 = arith.constant 0 : i32
    %c0_i32_2 = arith.constant 0 : i32
    return %c0_i32, %c0_i32_0, %c0_i32_1 : i32, i32, i32
  }
  func.func @transform_5(%arg0: i32, %arg1: i32) -> (i32, i32) {
    %c0_i32 = arith.constant 0 : i32
    %c0_i32_0 = arith.constant 0 : i32
    %c0_i32_1 = arith.constant 0 : i32
    return %c0_i32, %c0_i32_0 : i32, i32
  }
  func.func @transform_6(%arg0: i32, %arg1: i32) -> (i32, i32) {
    %c0_i32 = arith.constant 0 : i32
    %c0_i32_0 = arith.constant 0 : i32
    %c0_i32_1 = arith.constant 0 : i32
    return %c0_i32, %c0_i32_0 : i32, i32
  }
  func.func @transform_7(%arg0: i32, %arg1: i32) -> (i32, i32, i32, i32) {
    %c0_i32 = arith.constant 0 : i32
    %c0_i32_0 = arith.constant 0 : i32
    %c0_i32_1 = arith.constant 0 : i32
    return %arg0, %arg1, %c0_i32, %c0_i32_0 : i32, i32, i32, i32
  }
}

</mosaic_0001>

<bundles_post_ra>
// kernel: tpu_custom_call.1
= control target key start
LH: loop header
LB: loop body
LE: loop exit
PB: predicated region body
PF: predicated region fallthrough
CT: control target
= control target key end

     0   :  { %s1854_s24 = smov 0   ;;  %s1856_s25 = smov 0   ;;  %s2946_s0 = inlined_call_operand.vmem [shape: f32[2,16,16,4], index: 0, kind: input, shape index: {}]   ;;  %s2947_s1 = inlined_call_operand.vmem [shape: f32[4,4], index: 1, kind: input, shape index: {}]   ;;  %s2948_s2 = inlined_call_operand.vmem [shape: f32[1,4], index: 2, kind: input, shape index: {}]   ;;  %s2949_s3 = inlined_call_operand.vmem [shape: f32[1,4], index: 3, kind: input, shape index: {}]   ;;  %s2950_s4 = inlined_call_operand.vmem [shape: f32[3,3,4], index: 4, kind: input, shape index: {}]   ;;  %s2951_s5 = inlined_call_operand.vmem [shape: f32[1,4], index: 5, kind: input, shape index: {}]   ;;  %s2952_s6 = inlined_call_operand.vmem [shape: f32[1,4], index: 6, kind: input, shape index: {}]   ;;  %s2953_s7 = inlined_call_operand.vmem [shape: f32[2,16,16,8], index: 7, kind: output, shape index: {}]  }
   0x1   :  { %s1858_s26 = smov 0   ;;  %s1860_s27 = smov 0  }
   0x2   :  { %s1862_s28 = smov 0  }
   0x3 LB: > { %s26_s29 = sadd.s32 1, %s1798_s26  ;;  %s29_s30 = sadd.s32 1, %s1802_s27  ;;  %s1806_s28 = sphi %s1862_s28, %s17_s28   ;;  %s1802_s27 = sphi %s1860_s27, %s2957_s27   ;;  %s1798_s26 = sphi %s1858_s26, %s2956_s26   ;;  %s1794_s25 = sphi %s1856_s25, %s2955_s25   ;;  %s1790_s24 = sphi %s1854_s24, %s2954_s24  }
   0x4   : > { %p27_p0 = scmp.ge.s32.totalorder %s26_s29, 2  ;;  %p1666_p1 = scmp.ge.s32.totalorder %s1806_s28, 1 }
   0x5   : > { %p251_p2 = scmp.lt.s32.totalorder %s1806_s28, 5 }
   0x6   : > { %s2959_s29 = smov (%p27_p0, %s26_s29), 0  ;;  %s2961_s30 = smov (!%p27_p0, %s29_s30), %s1802_s27 }
   0x7   : > { %p252_p3 = pnand %p1666_p1, %p251_p2  ;;  %p31_p4 = scmp.ge.s32.totalorder %s2961_s30, 2 }
   0x8   : > { %p288_p5 = scmp.lt.s32.totalorder (!%p252_p3), %s1794_s25, 1  ;;  %s1884_s8 = sshll.u32 (!%p252_p3), %s1790_s24, 3 }
   0x9   : > { %s2963_s30 = smov (%p31_p4, %s2961_s30), 0  ;;  %255 = sbr.rel (%p252_p3) target bundleno = 571 (0x23b), region = 48 }
   0xa   : > { %s1674_s9 = sadd.s32 (!%p252_p3), 4294967295, %s1884_s8  ;;  %s1813_s19 = smov (!%p252_p3), 4  }
   0xb   : > { %p306_p6 = scmp.gt.s32.totalorder (!%p252_p3), %s1674_s9, 0  ;;  %p1675_p7 = scmp.lt.s32.totalorder (!%p252_p3), %s1674_s9, 6 }
   0xc   : > { %p296_p8 = scmp.lt.s32.totalorder (!%p252_p3), %s1884_s8, 15 }
   0xe   : > { %v1808_v0 = vmov 0   ;;  %s2965_s25 = smov (!%p288_p5, %s1794_s25), 1  ;;  %s2967_s9 = smov (!%p306_p6, %s1674_s9), 0  ;;  %v1809_v21 = vmov 1   ;;  %v1810_v24 = vmov 2   ;;  %v1811_v51 = vmov 3  }
   0xf   : > { %1754 = vset.pattern.permute.xlu2 %v1808_v0  ;;  %1753 = vset.pattern.permute.xlu1 %v1808_v0  ;;  %s1703_s10 = sshll.u32 %s2965_s25, 8  ;;  %s2969_s9 = smov (!%p1675_p7, %s2967_s9), 6  ;;  %v2024_v35 = vld [vmem:[%s2947_s1] sm:$0xf]  ;;  %vm312_vm0 = vcmask 31744   ;;  %vm315_vm1 = vcmask 25600  }
  0x10   : > { %1752 = vset.pattern.permute.xlu0 %v1808_v0  ;;  %s292_s13 = scalar_lea.vmem %s2946_s0, %s1703_s10  ;;  %s1680_s14 = sshll.u32 %s2969_s9, 4  ;;  %v2027_v36 = vperm.slane %v2024_v35, 0  ;;  %v2030_v37 = vperm.slane %v2024_v35, 1  ;;  %vm1550_vm2 = vcmask 64512  }
  0x11   : > { %s1896_s15 = scalar_lea.vmem %s292_s13, %s1680_s14  ;;  %s310_s22 = ssub.s32 %s2969_s9, %s1884_s8 }
  0x12   : > { %v1899_v1 = vld [vmem:[%s1896_s15 + $0x20] sm:$0xff]  ;;  %v1902_v2 = vld [vmem:[%s1896_s15 + $0x10] sm:$0xff]  ;;  %v1911_v4 = vld [vmem:[%s1896_s15 + $0x28] sm:$0xff]  ;;  %s1617_s23 = smul.u32 24, %s310_s22  ;;  %s2971_s8 = smov (!%p296_p8, %s1884_s8), 15 }
  0x13   : > { %v1905_v3 = vld [vmem:[%s1896_s15] sm:$0xff]  ;;  %395 = vperm.xlu2 %1754, %v1899_v1   ;;  %385 = vperm.xlu1 %1753, %v1902_v2   ;;  %v1914_v5 = vld [vmem:[%s1896_s15 + $0x18] sm:$0xff]  ;;  %v1917_v6 = vld [vmem:[%s1896_s15 + $0x8] sm:$0xff]  ;;  %s1670_s20 = sshll.u32 %s2971_s8, 1  ;;  %s1671_s21 = sshll.u32 %s2965_s25, 5 }
  0x14   : > { %375 = vperm.xlu0 %1752, %v1905_v3   ;;  %v1923_v7 = vld [vmem:[%s1896_s15 + $0x40] sm:$0xff]  ;;  %v1926_v8 = vld [vmem:[%s1896_s15 + $0x38] sm:$0xff]  ;;  %v1929_v9 = vld [vmem:[%s1896_s15 + $0x30] sm:$0xff]  ;;  %s2270_s24 = scalar_lea.vmem [#allocation2], %s1617_s23  ;;  %s300_s22 = sadd.s32 %s1671_s21, %s1670_s20 }
  0x15   : > { %v1935_v10 = vld [vmem:[%s1896_s15 + $0x58] sm:$0xff]  ;;  %v1938_v11 = vld [vmem:[%s1896_s15 + $0x50] sm:$0xff]  ;;  %v1941_v12 = vld [vmem:[%s1896_s15 + $0x48] sm:$0xff]  ;;  %s1672_s23 = sshll.u32 %s300_s22, 3 }
  0x16   : > { %v1947_v13 = vld [vmem:[%s1896_s15 + $0x70] sm:$0xff]  ;;  %v1950_v14 = vld [vmem:[%s1896_s15 + $0x68] sm:$0xff]  ;;  %v1953_v15 = vld [vmem:[%s1896_s15 + $0x60] sm:$0xff]  ;;  %s2865_s10 = scalar_lea.vmem %s2953_s7, %s1672_s23 }
  0x17   : > { %v1959_v16 = vld [vmem:[%s1896_s15 + $0x88] sm:$0xff]  ;;  %v1962_v17 = vld [vmem:[%s1896_s15 + $0x80] sm:$0xff]  ;;  %v1965_v18 = vld [vmem:[%s1896_s15 + $0x78] sm:$0xff] }
  0x18   : > { %v1971_v19 = vld [vmem:[%s1896_s15 + $0x98] sm:$0xff]  ;;  %v1974_v20 = vld [vmem:[%s1896_s15 + $0x90] sm:$0xff] }
  0x1b   : > { %400 = vperm.xlu2 %1754, %v1911_v4   ;;  %390 = vperm.xlu1 %1753, %v1914_v5  }
  0x1c   : > { %380 = vperm.xlu0 %1752, %v1917_v6  }
  0x23   : > { %415 = vperm.xlu2 %1754, %v1923_v7   ;;  %410 = vperm.xlu1 %1753, %v1926_v8  }
  0x24   : > { %405 = vperm.xlu0 %1752, %v1929_v9  }
  0x2b   : > { %430 = vperm.xlu2 %1754, %v1935_v10   ;;  %425 = vperm.xlu1 %1753, %v1938_v11  }
  0x2c   : > { %420 = vperm.xlu0 %1752, %v1941_v12  }
  0x33   : > { %445 = vperm.xlu2 %1754, %v1947_v13   ;;  %440 = vperm.xlu1 %1753, %v1950_v14  }
  0x34   : > { %435 = vperm.xlu0 %1752, %v1953_v15  }
  0x3b   : > { %460 = vperm.xlu2 %1754, %v1959_v16   ;;  %455 = vperm.xlu1 %1753, %v1962_v17  }
  0x3c   : > { %450 = vperm.xlu0 %1752, %v1965_v18  }
  0x43   : > { %1755 = vset.pattern.permute.xlu2 %v1809_v21  ;;  %470 = vperm.xlu1 %1753, %v1971_v19  }
  0x44   : > { %465 = vperm.xlu0 %1752, %v1974_v20   ;;  %515 = vperm.xlu2 %1755, %v1905_v3  }
  0x4b   : > { %1757 = vset.pattern.permute.xlu1 %v1809_v21 }
  0x4c   : > { %1756 = vset.pattern.permute.xlu0 %v1809_v21  ;;  %523 = vperm.xlu1 %1757, %v1902_v2  }
  0x4d   : > { %527 = vperm.xlu2 %1755, %v1914_v5   ;;  %519 = vperm.xlu0 %1756, %v1917_v6  }
  0x54   : > { %531 = vperm.xlu1 %1757, %v1899_v1  }
  0x55   : > { %535 = vperm.xlu2 %1755, %v1911_v4   ;;  %539 = vperm.xlu0 %1756, %v1929_v9  }
  0x5c   : > { %543 = vperm.xlu1 %1757, %v1926_v8  }
  0x5d   : > { %547 = vperm.xlu2 %1755, %v1923_v7   ;;  %551 = vperm.xlu0 %1756, %v1941_v12  }
  0x64   : > { %555 = vperm.xlu1 %1757, %v1938_v11  }
  0x65   : > { %559 = vperm.xlu2 %1755, %v1935_v10   ;;  %563 = vperm.xlu0 %1756, %v1953_v15  }
  0x6c   : > { %567 = vperm.xlu1 %1757, %v1950_v14  }
  0x6d   : > { %571 = vperm.xlu2 %1755, %v1947_v13   ;;  %575 = vperm.xlu0 %1756, %v1965_v18   ;;  %v1994_v22 = vpop.permute.xlu2 %395 }
  0x74   : > { %579 = vperm.xlu1 %1757, %v1962_v17  }
  0x75   : > { %583 = vperm.xlu2 %1755, %v1959_v16   ;;  %587 = vperm.xlu0 %1756, %v1974_v20   ;;  %v401_v23 = vpop.permute.xlu2 %400 }
  0x76   : > { %v479_v54 = vmul.f32 %v2027_v36, %v401_v23 }
  0x7c   : > { %591 = vperm.xlu1 %1757, %v1971_v19  }
  0x7d   : > { %1758 = vset.pattern.permute.xlu2 %v1810_v24  ;;  %1759 = vset.pattern.permute.xlu0 %v1810_v24  ;;  %v416_v25 = vpop.permute.xlu2 %415 }
  0x7e   : > { %636 = vperm.xlu2 %1758, %v1905_v3   ;;  %640 = vperm.xlu0 %1759, %v1917_v6   ;;  %v482_v60 = vmul.f32 %v2027_v36, %v416_v25 }
  0x84   : > { %1760 = vset.pattern.permute.xlu1 %v1810_v24 }
  0x85   : > { %v2002_v26 = vpop.permute.xlu2 %430  ;;  %644 = vperm.xlu1 %1760, %v1902_v2   ;;  %v386_v27 = vpop.permute.xlu1 %385 }
  0x86   : > { %648 = vperm.xlu2 %1758, %v1914_v5   ;;  %660 = vperm.xlu0 %1759, %v1929_v9   ;;  %v376_v28 = vpop.permute.xlu0 %375  ;;  %v476_v0 = vmul.f32 %v2027_v36, %v386_v27  ;;  %v485_v21 = vmul.f32 %v2027_v36, %v2002_v26 }
  0x87   : > { %v474_v38 = vmul.f32 %v2027_v36, %v376_v28 }
  0x8d   : > { %v2007_v29 = vpop.permute.xlu2 %445  ;;  %652 = vperm.xlu1 %1760, %v1899_v1   ;;  %v391_v30 = vpop.permute.xlu1 %390 }
  0x8e   : > { %656 = vperm.xlu2 %1758, %v1911_v4   ;;  %672 = vperm.xlu0 %1759, %v1941_v12   ;;  %v381_v31 = vpop.permute.xlu0 %380  ;;  %v477_v47 = vmul.f32 %v2027_v36, %v391_v30 }
  0x8f   : > { %v475_v23 = vmul.f32 %v2027_v36, %v381_v31 }
  0x95   : > { %v2012_v32 = vpop.permute.xlu2 %460  ;;  %664 = vperm.xlu1 %1760, %v1926_v8   ;;  %v2015_v33 = vpop.permute.xlu1 %410 }
  0x96   : > { %668 = vperm.xlu2 %1758, %v1923_v7   ;;  %684 = vperm.xlu0 %1759, %v1953_v15   ;;  %v2019_v34 = vpop.permute.xlu0 %405 }
  0x9d   : > { %676 = vperm.xlu1 %1760, %v1938_v11   ;;  %v2034_v39 = vpop.permute.xlu1 %425 }
  0x9e   : > { %680 = vperm.xlu2 %1758, %v1935_v10   ;;  %696 = vperm.xlu0 %1759, %v1965_v18   ;;  %v2038_v40 = vpop.permute.xlu0 %420  ;;  %v516_v41 = vpop.permute.xlu2 %515 }
  0x9f   : > { %v595_v42 = vmul.f32 %v2030_v37, %v516_v41  ;;  %v480_v41 = vmul.f32 %v2027_v36, %v2019_v34 }
  0xa1   : > { %v2041_v43 = vadd.f32 %v595_v42, %v474_v38  ;;  %v488_v38 = vmul.f32 %v2027_v36, %v2007_v29 }
  0xa5   : > { %688 = vperm.xlu1 %1760, %v1950_v14   ;;  %v2044_v44 = vpop.permute.xlu1 %440 }
  0xa6   : > { %692 = vperm.xlu2 %1758, %v1947_v13   ;;  %708 = vperm.xlu0 %1759, %v1974_v20   ;;  %v2048_v45 = vpop.permute.xlu0 %435 }
  0xa7   : > { %v528_v46 = vpop.permute.xlu2 %527 }
  0xa8   : > { %v598_v48 = vmul.f32 %v2030_v37, %v528_v46 }
  0xaa   : > { %v2052_v49 = vadd.f32 %v598_v48, %v477_v47 }
  0xad   : > { %700 = vperm.xlu1 %1760, %v1962_v17   ;;  %v2055_v50 = vpop.permute.xlu1 %455 }
  0xae   : > { %704 = vperm.xlu2 %1758, %v1959_v16   ;;  %1762 = vset.pattern.permute.xlu0 %v1811_v51  ;;  %v2058_v52 = vpop.permute.xlu0 %450 }
  0xaf   : > { %v536_v53 = vpop.permute.xlu2 %535  ;;  %761 = vperm.xlu0 %1762, %v1917_v6  }
  0xb0   : > { %v600_v55 = vmul.f32 %v2030_v37, %v536_v53  ;;  %v483_v53 = vmul.f32 %v2027_v36, %v2038_v40 }
  0xb2   : > { %v2063_v56 = vadd.f32 %v600_v55, %v479_v54 }
  0xb5   : > { %712 = vperm.xlu1 %1760, %v1971_v19   ;;  %v2066_v57 = vpop.permute.xlu1 %470 }
  0xb6   : > { %1761 = vset.pattern.permute.xlu2 %v1811_v51  ;;  %v2068_v58 = vpop.permute.xlu0 %465 }
  0xb7   : > { %757 = vperm.xlu2 %1761, %v1905_v3   ;;  %v548_v59 = vpop.permute.xlu2 %547  ;;  %781 = vperm.xlu0 %1762, %v1929_v9  }
  0xb8   : > { %v603_v61 = vmul.f32 %v2030_v37, %v548_v59 }
  0xba   : > { %v2074_v62 = vadd.f32 %v603_v61, %v482_v60  ;;  %v486_v60 = vmul.f32 %v2027_v36, %v2048_v45  ;;  %v489_v45 = vmul.f32 %v2027_v36, %v2058_v52  ;;  %v492_v52 = vmul.f32 %v2027_v36, %v2068_v58 }
  0xbd   : > { %1763 = vset.pattern.permute.xlu1 %v1811_v51  ;;  %v491_v51 = vmul.f32 %v2027_v36, %v2012_v32 }
  0xbe   : > { %765 = vperm.xlu1 %1763, %v1902_v2   ;;  %v524_v63 = vpop.permute.xlu1 %523 }
  0xbf   : > { %v597_v6 = vmul.f32 %v2030_v37, %v524_v63  ;;  %769 = vperm.xlu2 %1761, %v1914_v5   ;;  %v560_v3 = vpop.permute.xlu2 %559  ;;  %793 = vperm.xlu0 %1762, %v1941_v12   ;;  %v520_v9 = vpop.permute.xlu0 %519  ;;  %v478_v12 = vmul.f32 %v2027_v36, %v1994_v22 }
  0xc0   : > { %v606_v24 = vmul.f32 %v2030_v37, %v560_v3  ;;  %v596_v2 = vmul.f32 %v2030_v37, %v520_v9 }
  0xc1   : > { %v2086_v25 = vadd.f32 %v597_v6, %v476_v0  ;;  %v487_v6 = vmul.f32 %v2027_v36, %v2044_v44  ;;  %v490_v44 = vmul.f32 %v2027_v36, %v2055_v50  ;;  %v493_v50 = vmul.f32 %v2027_v36, %v2066_v57 }
  0xc2   : > { %v2088_v27 = vadd.f32 %v606_v24, %v485_v21  ;;  %v2090_v28 = vadd.f32 %v596_v2, %v475_v23 }
  0xc6   : > { %773 = vperm.xlu1 %1763, %v1899_v1   ;;  %v532_v5 = vpop.permute.xlu1 %531 }
  0xc7   : > { %v599_v26 = vmul.f32 %v2030_v37, %v532_v5  ;;  %777 = vperm.xlu2 %1761, %v1911_v4   ;;  %v572_v30 = vpop.permute.xlu2 %571  ;;  %805 = vperm.xlu0 %1762, %v1953_v15   ;;  %v540_v31 = vpop.permute.xlu0 %539  ;;  %v481_v15 = vmul.f32 %v2027_v36, %v2015_v33 }
  0xc8   : > { %v609_v1 = vmul.f32 %v2030_v37, %v572_v30  ;;  %v601_v42 = vmul.f32 %v2030_v37, %v540_v31 }
  0xc9   : > { %v2104_v46 = vadd.f32 %v599_v26, %v478_v12 }
  0xca   : > { %v2106_v22 = vadd.f32 %v609_v1, %v488_v38  ;;  %v2108_v47 = vadd.f32 %v601_v42, %v480_v41  ;;  %v1812_v42 = vmov 0.0  }
  0xcb   : > { %317 = vst.msk [vmem:[#allocation2 + $0x18] sm:$0xff] %vm312_vm0, %v1812_v42 }
  0xcc   : > { %318 = vst.msk [vmem:[#allocation2 + $0x20] sm:$0xff] %vm312_vm0, %v1812_v42 }
  0xcd   : > { %319 = vst.msk [vmem:[#allocation2 + $0x28] sm:$0x3] %vm315_vm1, %v1812_v42 }
  0xce   : > { %785 = vperm.xlu1 %1763, %v1926_v8   ;;  %v544_v4 = vpop.permute.xlu1 %543  ;;  %320 = vst.msk [vmem:[#allocation2 + $0x30] sm:$0xff] %vm312_vm0, %v1812_v42 }
  0xcf   : > { %v602_v29 = vmul.f32 %v2030_v37, %v544_v4  ;;  %789 = vperm.xlu2 %1761, %v1923_v7   ;;  %v584_v34 = vpop.permute.xlu2 %583  ;;  %817 = vperm.xlu0 %1762, %v1965_v18   ;;  %v552_v48 = vpop.permute.xlu0 %551  ;;  %v484_v18 = vmul.f32 %v2027_v36, %v2034_v39  ;;  %321 = vst.msk [vmem:[#allocation2 + $0x38] sm:$0xff] %vm312_vm0, %v1812_v42 }
  0xd0   : > { %v612_v8 = vmul.f32 %v2030_v37, %v584_v34  ;;  %v604_v54 = vmul.f32 %v2030_v37, %v552_v48  ;;  %322 = vst.msk [vmem:[#allocation2 + $0x40] sm:$0x3] %vm315_vm1, %v1812_v42  ;;  %v2217_v48 = vperm.slane %v2024_v35, 3 }
  0xd1   : > { %v2122_v55 = vadd.f32 %v602_v29, %v481_v15  ;;  %323 = vst.msk [vmem:[#allocation2 + $0x48] sm:$0xff] %vm312_vm0, %v1812_v42  ;;  %v2209_v29 = vperm.slane %v2024_v35, 2  ;;  %v2231_v35 = vld [vmem:[%s2948_s2] ss:$0 sm:$0xff] }
  0xd2   : > { %v2124_v33 = vadd.f32 %v612_v8, %v491_v51  ;;  %v2126_v59 = vadd.f32 %v604_v54, %v483_v53  ;;  %324 = vst.msk [vmem:[#allocation2 + $0x50] sm:$0xff] %vm312_vm0, %v1812_v42 }
  0xd3   : > { %325 = vst.msk [vmem:[#allocation2 + $0x58] sm:$0x3] %vm315_vm1, %v1812_v42 }
  0xd4   : > { %326 = vst.msk [vmem:[#allocation2 + $0x60] sm:$0xff] %vm312_vm0, %v1812_v42 }
  0xd5   : > { %327 = vst.msk [vmem:[#allocation2 + $0x68] sm:$0xff] %vm312_vm0, %v1812_v42 }
  0xd6   : > { %797 = vperm.xlu1 %1763, %v1938_v11   ;;  %v556_v7 = vpop.permute.xlu1 %555  ;;  %328 = vst.msk [vmem:[#allocation2 + $0x70] sm:$0x3] %vm315_vm1, %v1812_v42 }
  0xd7   : > { %v605_v32 = vmul.f32 %v2030_v37, %v556_v7  ;;  %801 = vperm.xlu2 %1761, %v1935_v10   ;;  %829 = vperm.xlu0 %1762, %v1974_v20   ;;  %v564_v40 = vpop.permute.xlu0 %563  ;;  %329 = vst.msk [vmem:[#allocation2 + $0x78] sm:$0xff] %vm312_vm0, %v1812_v42 }
  0xd8   : > { %v607_v61 = vmul.f32 %v2030_v37, %v564_v40  ;;  %v637_v63 = vpop.permute.xlu2 %636  ;;  %330 = vst.msk [vmem:[#allocation2 + $0x80] sm:$0xff] %vm312_vm0, %v1812_v42 }
  0xd9   : > { %v2137_v0 = vadd.f32 %v605_v32, %v484_v18  ;;  %331 = vst.msk [vmem:[#allocation2 + $0x88] sm:$0x3] %vm315_vm1, %v1812_v42  ;;  %v716_v34 = vmul.f32 %v2209_v29, %v637_v63  ;;  %v2239_v18 = vld [vmem:[%s2949_s3] ss:$0 sm:$0xff] }
  0xda   : > { %v2139_v11 = vadd.f32 %v607_v61, %v486_v60  ;;  %332 = vst.msk [vmem:[#allocation2 + $0x90] sm:$0xff] %vm312_vm0, %v1812_v42 }
  0xdb   : > { %333 = vst.msk [vmem:[#allocation2 + $0x98] sm:$0xff] %vm312_vm0, %v1812_v42  ;;  %v736_v54 = vadd.f32 %v716_v34, %v2041_v43 }
  0xdc   : > { %334 = vst.msk [vmem:[#allocation2 + $0xa0] sm:$0x3] %vm315_vm1, %v1812_v42 }
  0xdd   : > { %335 = vst.msk [vmem:[#allocation2 + $0xa8] sm:$0xff] %vm312_vm0, %v1812_v42 }
  0xde   : > { %809 = vperm.xlu1 %1763, %v1950_v14   ;;  %v568_v39 = vpop.permute.xlu1 %567  ;;  %336 = vst.msk [vmem:[#allocation2 + $0xb0] sm:$0xff] %vm312_vm0, %v1812_v42 }
  0xdf   : > { %v608_v10 = vmul.f32 %v2030_v37, %v568_v39  ;;  %813 = vperm.xlu2 %1761, %v1947_v13   ;;  %v576_v20 = vpop.permute.xlu0 %575  ;;  %337 = vst.msk [vmem:[#allocation2 + $0xb8] sm:$0x3] %vm315_vm1, %v1812_v42 }
  0xe0   : > { %v610_v3 = vmul.f32 %v2030_v37, %v576_v20  ;;  %v2149_v9 = vpop.permute.xlu2 %648  ;;  %338 = vst.msk [vmem:[#allocation2 + $0xc0] sm:$0xff] %vm312_vm0, %v1812_v42 }
  0xe1   : > { %v2151_v21 = vadd.f32 %v608_v10, %v487_v6  ;;  %339 = vst.msk [vmem:[#allocation2 + $0xc8] sm:$0xff] %vm312_vm0, %v1812_v42  ;;  %v719_v43 = vmul.f32 %v2209_v29, %v2149_v9 }
  0xe2   : > { %v2153_v23 = vadd.f32 %v610_v3, %v489_v45  ;;  %340 = vst.msk [vmem:[#allocation2 + $0xd0] sm:$0x3] %vm315_vm1, %v1812_v42 }
  0xe3   : > { %341 = vst.msk [vmem:[#allocation2 + $0xd8] sm:$0xff] %vm312_vm0, %v1812_v42  ;;  %v739_v6 = vadd.f32 %v719_v43, %v2052_v49 }
  0xe4   : > { %342 = vst.msk [vmem:[#allocation2 + $0xe0] sm:$0xff] %vm312_vm0, %v1812_v42 }
  0xe5   : > { %343 = vst.msk [vmem:[#allocation2 + $0xe8] sm:$0x3] %vm315_vm1, %v1812_v42 }
  0xe6   : > { %821 = vperm.xlu1 %1763, %v1962_v17   ;;  %v580_v14 = vpop.permute.xlu1 %579  ;;  %344 = vst.msk [vmem:[#allocation2 + $0xf0] sm:$0xff] %vm312_vm0, %v1812_v42 }
  0xe7   : > { %v611_v13 = vmul.f32 %v2030_v37, %v580_v14  ;;  %825 = vperm.xlu2 %1761, %v1959_v16   ;;  %v588_v24 = vpop.permute.xlu0 %587  ;;  %345 = vst.msk [vmem:[#allocation2 + $0xf8] sm:$0xff] %vm312_vm0, %v1812_v42 }
  0xe8   : > { %v613_v2 = vmul.f32 %v2030_v37, %v588_v24  ;;  %v2163_v5 = vpop.permute.xlu2 %656  ;;  %346 = vst.msk [vmem:[#allocation2 + $0x100] sm:$0x3] %vm315_vm1, %v1812_v42 }
  0xe9   : > { %v2165_v12 = vadd.f32 %v611_v13, %v490_v44  ;;  %v721_v3 = vmul.f32 %v2209_v29, %v2163_v5 }
  0xea   : > { %v2167_v26 = vadd.f32 %v613_v2, %v492_v52 }
  0xeb   : > { %v741_v13 = vadd.f32 %v721_v3, %v2063_v56 }
  0xee   : > { %833 = vperm.xlu1 %1763, %v1971_v19   ;;  %v592_v17 = vpop.permute.xlu1 %591 }
  0xef   : > { %v614_v16 = vmul.f32 %v2030_v37, %v592_v17 }
  0xf0   : > { %v2173_v30 = vpop.permute.xlu2 %668  ;;  %v2175_v31 = vpop.permute.xlu0 %640 }
  0xf1   : > { %v2177_v58 = vadd.f32 %v614_v16, %v493_v50  ;;  %v717_v9 = vmul.f32 %v2209_v29, %v2175_v31  ;;  %v724_v42 = vmul.f32 %v2209_v29, %v2173_v30 }
  0xf3   : > { %v737_v2 = vadd.f32 %v717_v9, %v2090_v28 }
  0xf7   : > { %v2179_v38 = vpop.permute.xlu1 %644 }
  0xf8   : > { %v2181_v41 = vpop.permute.xlu2 %680  ;;  %v2183_v1 = vpop.permute.xlu0 %660 }
  0xf9   : > { %v722_v28 = vmul.f32 %v2209_v29, %v2183_v1 }
  0xff   : > { %v2185_v19 = vpop.permute.xlu1 %652 }
 0x100   : > { %v2188_v36 = vpop.permute.xlu2 %692  ;;  %v2190_v37 = vpop.permute.xlu0 %672 }
 0x107   : > { %v2199_v57 = vpop.permute.xlu1 %664 }
 0x108   : > { %v2202_v4 = vpop.permute.xlu2 %704  ;;  %v2204_v15 = vpop.permute.xlu0 %684 }
 0x10f   : > { %v2220_v51 = vpop.permute.xlu1 %676 }
 0x110   : > { %v2223_v53 = vpop.permute.xlu0 %696 }
 0x111   : > { %v758_v8 = vpop.permute.xlu2 %757 }
 0x112   : > { %v837_v7 = vmul.f32 %v2217_v48, %v758_v8 }
 0x114   : > { %v857_v32 = vadd.f32 %v837_v7, %v736_v54 }
 0x116   : > { %v881_v40 = vmul.f32 %v2231_v35, %v857_v32 }
 0x117   : > { %v2249_v60 = vpop.permute.xlu1 %688 }
 0x118   : > { %v905_v61 = vadd.f32 %v2239_v18, %v881_v40  ;;  %v2253_v63 = vpop.permute.xlu0 %708  ;;  %v744_v40 = vadd.f32 %v724_v42, %v2074_v62  ;;  %v725_v62 = vmul.f32 %v2209_v29, %v2190_v37 }
 0x119   : > { %v770_v39 = vpop.permute.xlu2 %769 }
 0x11a   : > { %v840_v10 = vmul.f32 %v2217_v48, %v770_v39  ;;  %v925_v20 = vmax.f32 %v905_v61, 0.0  ;;  %v745_v37 = vadd.f32 %v725_v62, %v2126_v59  ;;  %v728_v59 = vmul.f32 %v2209_v29, %v2204_v15 }
 0x11b   : > { %v733_v62 = vmul.f32 %v2209_v29, %v2202_v4 }
 0x11c   : > { %v860_v45 = vadd.f32 %v840_v10, %v739_v6  ;;  %1681 = vst.msk [vmem:[%s2270_s24 + $0x31] sm:$0xff] %vm312_vm0, %v925_v20  ;;  %v742_v6 = vadd.f32 %v722_v28, %v2108_v47  ;;  %v718_v20 = vmul.f32 %v2209_v29, %v2179_v38 }
 0x11e   : > { %v884_v14 = vmul.f32 %v2231_v35, %v860_v45  ;;  %v727_v45 = vmul.f32 %v2209_v29, %v2181_v41 }
 0x11f   : > { %v2267_v44 = vpop.permute.xlu1 %700 }
 0x120   : > { %v908_v49 = vadd.f32 %v2239_v18, %v884_v14  ;;  %v747_v38 = vadd.f32 %v727_v45, %v2088_v27 }
 0x121   : > { %v778_v24 = vpop.permute.xlu2 %777  ;;  %v762_v52 = vpop.permute.xlu0 %761 }
 0x122   : > { %v928_v5 = vmax.f32 %v908_v49, 0.0  ;;  %v842_v17 = vmul.f32 %v2217_v48, %v778_v24  ;;  %v838_v50 = vmul.f32 %v2217_v48, %v762_v52 }
 0x124   : > { %v862_v16 = vadd.f32 %v842_v17, %v741_v13  ;;  %v858_v31 = vadd.f32 %v838_v50, %v737_v2  ;;  %1684 = vst.msk [vmem:[%s2270_s24 + $0x51] sm:$0xff] %vm312_vm0, %v928_v5  ;;  %v738_v13 = vadd.f32 %v718_v20, %v2086_v25  ;;  %v720_v25 = vmul.f32 %v2209_v29, %v2185_v19 }
 0x126   : > { %v886_v34 = vmul.f32 %v2231_v35, %v862_v16  ;;  %v882_v56 = vmul.f32 %v2231_v35, %v858_v31 }
 0x127   : > { %v2286_v8 = vpop.permute.xlu1 %712 }
 0x128   : > { %v910_v54 = vadd.f32 %v2239_v18, %v886_v34  ;;  %v906_v7 = vadd.f32 %v2239_v18, %v882_v56  ;;  %v730_v34 = vmul.f32 %v2209_v29, %v2188_v36 }
 0x129   : > { %v790_v32 = vpop.permute.xlu2 %789  ;;  %v782_v43 = vpop.permute.xlu0 %781 }
 0x12a   : > { %v930_v30 = vmax.f32 %v910_v54, 0.0  ;;  %v926_v61 = vmax.f32 %v906_v7, 0.0  ;;  %v845_v39 = vmul.f32 %v2217_v48, %v790_v32  ;;  %v843_v10 = vmul.f32 %v2217_v48, %v782_v43 }
 0x12b   : > { %v740_v7 = vadd.f32 %v720_v25, %v2104_v46  ;;  %v750_v15 = vadd.f32 %v730_v34, %v2106_v22  ;;  %v723_v22 = vmul.f32 %v2209_v29, %v2199_v57 }
 0x12c   : > { %v865_v1 = vadd.f32 %v845_v39, %v744_v40  ;;  %1682 = vst.msk [vmem:[%s2270_s24 + $0x39] sm:$0xff] %vm312_vm0, %v926_v61  ;;  %v863_v3 = vadd.f32 %v843_v10, %v742_v6  ;;  %v748_v40 = vadd.f32 %v728_v59, %v2139_v11 }
 0x12d   : > { %1686 = vst.msk [vmem:[%s2270_s24 + $0x69] sm:$0xff] %vm312_vm0, %v930_v30 }
 0x12e   : > { %v889_v9 = vmul.f32 %v2231_v35, %v865_v1  ;;  %v887_v47 = vmul.f32 %v2231_v35, %v863_v3 }
 0x130   : > { %v913_v14 = vadd.f32 %v2239_v18, %v889_v9  ;;  %v766_v49 = vpop.permute.xlu1 %765  ;;  %v911_v41 = vadd.f32 %v2239_v18, %v887_v47  ;;  %v731_v9 = vmul.f32 %v2209_v29, %v2223_v53  ;;  %v753_v53 = vadd.f32 %v733_v62, %v2124_v33 }
 0x131   : > { %v839_v24 = vmul.f32 %v2217_v48, %v766_v49  ;;  %v802_v52 = vpop.permute.xlu2 %801  ;;  %v794_v2 = vpop.permute.xlu0 %793  ;;  %v726_v33 = vmul.f32 %v2209_v29, %v2220_v51 }
 0x132   : > { %v933_v5 = vmax.f32 %v913_v14, 0.0  ;;  %v848_v17 = vmul.f32 %v2217_v48, %v802_v52  ;;  %v846_v50 = vmul.f32 %v2217_v48, %v794_v2  ;;  %v931_v16 = vmax.f32 %v911_v41, 0.0 }
 0x133   : > { %v859_v31 = vadd.f32 %v839_v24, %v738_v13  ;;  %v743_v13 = vadd.f32 %v723_v22, %v2122_v55  ;;  %v751_v24 = vadd.f32 %v731_v9, %v2153_v23 }
 0x134   : > { %v868_v27 = vadd.f32 %v848_v17, %v747_v38  ;;  %v866_v42 = vadd.f32 %v846_v50, %v745_v37  ;;  %1689 = vst.msk [vmem:[%s2270_s24 + $0x91] sm:$0xff] %vm312_vm0, %v933_v5 }
 0x135   : > { %v883_v56 = vmul.f32 %v2231_v35, %v859_v31  ;;  %1687 = vst.msk [vmem:[%s2270_s24 + $0x79] sm:$0xff] %vm312_vm0, %v931_v16 }
 0x136   : > { %v892_v28 = vmul.f32 %v2231_v35, %v868_v27  ;;  %v890_v54 = vmul.f32 %v2231_v35, %v866_v42  ;;  %v734_v42 = vmul.f32 %v2209_v29, %v2253_v63 }
 0x137   : > { %v907_v19 = vadd.f32 %v2239_v18, %v883_v56 }
 0x138   : > { %v916_v32 = vadd.f32 %v2239_v18, %v892_v28  ;;  %v914_v36 = vadd.f32 %v2239_v18, %v890_v54  ;;  %v774_v43 = vpop.permute.xlu1 %773 }
 0x139   : > { %v927_v30 = vmax.f32 %v907_v19, 0.0  ;;  %v841_v61 = vmul.f32 %v2217_v48, %v774_v43  ;;  %v814_v39 = vpop.permute.xlu2 %813  ;;  %v806_v6 = vpop.permute.xlu0 %805  ;;  %v746_v19 = vadd.f32 %v726_v33, %v2137_v0  ;;  %v729_v0 = vmul.f32 %v2209_v29, %v2249_v60 }
 0x13a   : > { %v936_v10 = vmax.f32 %v916_v32, 0.0  ;;  %v934_v1 = vmax.f32 %v914_v36, 0.0  ;;  %v851_v46 = vmul.f32 %v2217_v48, %v814_v39  ;;  %v849_v20 = vmul.f32 %v2217_v48, %v806_v6 }
 0x13b   : > { %v861_v45 = vadd.f32 %v841_v61, %v740_v7  ;;  %1683 = vst.msk [vmem:[%s2270_s24 + $0x49] sm:$0xff] %vm312_vm0, %v927_v30  ;;  %v754_v36 = vadd.f32 %v734_v42, %v2167_v26  ;;  %v732_v60 = vmul.f32 %v2209_v29, %v2267_v44 }
 0x13c   : > { %v871_v3 = vadd.f32 %v851_v46, %v750_v15  ;;  %v869_v11 = vadd.f32 %v849_v20, %v748_v40  ;;  %1690 = vst.msk [vmem:[%s2270_s24 + $0x99] sm:$0xff] %vm312_vm0, %v934_v1  ;;  %v749_v46 = vadd.f32 %v729_v0, %v2151_v21 }
 0x13d   : > { %v885_v47 = vmul.f32 %v2231_v35, %v861_v45  ;;  %1692 = vst.msk [vmem:[%s2270_s24 + $0xb1] sm:$0xff] %vm312_vm0, %v936_v10  ;;  %v752_v21 = vadd.f32 %v732_v60, %v2165_v12 }
 0x13e   : > { %v895_v14 = vmul.f32 %v2231_v35, %v871_v3  ;;  %v893_v49 = vmul.f32 %v2231_v35, %v869_v11 }
 0x13f   : > { %v909_v57 = vadd.f32 %v2239_v18, %v885_v47 }
 0x140   : > { %v919_v38 = vadd.f32 %v2239_v18, %v895_v14  ;;  %v917_v4 = vadd.f32 %v2239_v18, %v893_v49  ;;  %v786_v41 = vpop.permute.xlu1 %785 }
 0x141   : > { %v929_v52 = vmax.f32 %v909_v57, 0.0  ;;  %v844_v2 = vmul.f32 %v2217_v48, %v786_v41  ;;  %v826_v37 = vpop.permute.xlu2 %825  ;;  %v818_v5 = vpop.permute.xlu0 %817  ;;  %v735_v57 = vmul.f32 %v2209_v29, %v2286_v8  ;;  %v967_v29 = vld [vmem:[%s2950_s4] sm:$0x7] }
 0x142   : > { %v939_v17 = vmax.f32 %v919_v38, 0.0  ;;  %v937_v50 = vmax.f32 %v917_v4, 0.0  ;;  %v854_v55 = vmul.f32 %v2217_v48, %v826_v37  ;;  %v852_v16 = vmul.f32 %v2217_v48, %v818_v5 }
 0x143   : > { %v864_v31 = vadd.f32 %v844_v2, %v743_v13  ;;  %1685 = vst.msk [vmem:[%s2270_s24 + $0x61] sm:$0xff] %vm312_vm0, %v929_v52  ;;  %v755_v4 = vadd.f32 %v735_v57, %v2177_v58  ;;  %v968_v58 = vld [vmem:[%s2950_s4 + $0x4] sm:$0x7]  ;;  %v2427_v8 = vperm.slane %v967_v29, 0 }
 0x144   : > { %v874_v25 = vadd.f32 %v854_v55, %v753_v53  ;;  %v872_v27 = vadd.f32 %v852_v16, %v751_v24  ;;  %1693 = vst.msk [vmem:[%s2270_s24 + $0xc1] sm:$0xff] %vm312_vm0, %v937_v50  ;;  %v2433_v37 = vperm.slane %v968_v58, 0  ;;  %v2435_v5 = vperm.slane %v968_v58, 1 }
 0x145   : > { %v888_v23 = vmul.f32 %v2231_v35, %v864_v31  ;;  %1695 = vst.msk [vmem:[%s2270_s24 + $0xd9] sm:$0xff] %vm312_vm0, %v939_v17  ;;  %v2439_v16 = vperm.slane %v968_v58, 2 }
 0x146   : > { %v898_v34 = vmul.f32 %v2231_v35, %v874_v25  ;;  %v896_v59 = vmul.f32 %v2231_v35, %v872_v27 }
 0x147   : > { %v912_v56 = vadd.f32 %v2239_v18, %v888_v23 }
 0x148   : > { %v922_v28 = vadd.f32 %v2239_v18, %v898_v34  ;;  %v920_v54 = vadd.f32 %v2239_v18, %v896_v59  ;;  %v798_v51 = vpop.permute.xlu1 %797 }
 0x149   : > { %v932_v7 = vmax.f32 %v912_v56, 0.0  ;;  %v847_v32 = vmul.f32 %v2217_v48, %v798_v51  ;;  %v830_v63 = vpop.permute.xlu0 %829 }
 0x14a   : > { %v942_v43 = vmax.f32 %v922_v28, 0.0  ;;  %v940_v15 = vmax.f32 %v920_v54, 0.0  ;;  %v855_v40 = vmul.f32 %v2217_v48, %v830_v63 }
 0x14b   : > { %v867_v30 = vadd.f32 %v847_v32, %v746_v19  ;;  %1688 = vst.msk [vmem:[%s2270_s24 + $0x81] sm:$0xff] %vm312_vm0, %v932_v7 }
 0x14c   : > { %v875_v61 = vadd.f32 %v855_v40, %v754_v36  ;;  %1696 = vst.msk [vmem:[%s2270_s24 + $0xe1] sm:$0xff] %vm312_vm0, %v940_v15 }
 0x14d   : > { %v891_v39 = vmul.f32 %v2231_v35, %v867_v30  ;;  %1698 = vst.msk [vmem:[%s2270_s24 + $0xf9] sm:$0xff] %vm312_vm0, %v942_v43 }
 0x14e   : > { %v899_v26 = vmul.f32 %v2231_v35, %v875_v61 }
 0x14f   : > { %v915_v6 = vadd.f32 %v2239_v18, %v891_v39 }
 0x150   : > { %v923_v10 = vadd.f32 %v2239_v18, %v899_v26  ;;  %v810_v1 = vpop.permute.xlu1 %809 }
 0x151   : > { %v935_v20 = vmax.f32 %v915_v6, 0.0  ;;  %v850_v45 = vmul.f32 %v2217_v48, %v810_v1 }
 0x152   : > { %v943_v22 = vmax.f32 %v923_v10, 0.0 }
 0x153   : > { %v870_v3 = vadd.f32 %v850_v45, %v749_v46  ;;  %1691 = vst.msk [vmem:[%s2270_s24 + $0xa9] sm:$0xff] %vm312_vm0, %v935_v20 }
 0x154   : > { %1699 = vst.msk [vmem:[%s2270_s24 + $0x109] sm:$0xff] %vm312_vm0, %v943_v22 }
 0x155   : > { %v894_v11 = vmul.f32 %v2231_v35, %v870_v3 }
 0x157   : > { %v918_v62 = vadd.f32 %v2239_v18, %v894_v11 }
 0x158   : > { %v822_v9 = vpop.permute.xlu1 %821 }
 0x159   : > { %v938_v47 = vmax.f32 %v918_v62, 0.0  ;;  %v853_v14 = vmul.f32 %v2217_v48, %v822_v9 }
 0x15b   : > { %v873_v49 = vadd.f32 %v853_v14, %v752_v21  ;;  %1694 = vst.msk [vmem:[%s2270_s24 + $0xc9] sm:$0xff] %vm312_vm0, %v938_v47 }
 0x15d   : > { %v897_v44 = vmul.f32 %v2231_v35, %v873_v49 }
 0x15f   : > { %v921_v13 = vadd.f32 %v2239_v18, %v897_v44 }
 0x160   : > { %v834_v38 = vpop.permute.xlu1 %833 }
 0x161   : > { %v941_v41 = vmax.f32 %v921_v13, 0.0  ;;  %v856_v12 = vmul.f32 %v2217_v48, %v834_v38  ;;  %v969_v48 = vld [vmem:[%s2950_s4 + $0x8] sm:$0x7] }
 0x162   : > { %v2441_v31 = vperm.slane %v969_v48, 0  ;;  %v2452_v34 = vperm.slane %v969_v48, 1  ;;  %v2454_v59 = vperm.slane %v969_v48, 2 }
 0x163   : > { %v876_v53 = vadd.f32 %v856_v12, %v755_v4  ;;  %1697 = vst.msk [vmem:[%s2270_s24 + $0xf1] sm:$0xff] %vm312_vm0, %v941_v41 }
 0x165   : > { %v900_v24 = vmul.f32 %v2231_v35, %v876_v53  ;;  %v2429_v35 = vperm.slane %v967_v29, 1 }
 0x167   : > { %v924_v52 = vadd.f32 %v2239_v18, %v900_v24  ;;  %v2431_v18 = vperm.slane %v967_v29, 2 }
 0x169   : > { %v944_v2 = vmax.f32 %v924_v52, 0.0 }
 0x16b   : > { %1700 = vst.msk [vmem:[%s2270_s24 + $0x111] sm:$0xff] %vm312_vm0, %v944_v2 }
 0x172   : > { %v973_v17 = vld [vmem:[#allocation2 + $0x30] sm:$0xff]  ;;  %v2446_v33 = vld [vmem:[#allocation2 + $0x48] sm:$0xff]  ;;  %v2457_v28 = vld [vmem:[#allocation2 + $0x60] sm:$0xff] }
 0x173   : > { %v2437_v50 = vld [vmem:[#allocation2 + $0x31] sm:$0xff]  ;;  %v990_v25 = vmul.f32 %v2427_v8, %v973_v17  ;;  %v2448_v23 = vld [vmem:[#allocation2 + $0x49] sm:$0xff]  ;;  %v2459_v54 = vld [vmem:[#allocation2 + $0x61] sm:$0xff]  ;;  %v1138_v7 = vmul.f32 %v2433_v37, %v2446_v33  ;;  %v1136_v15 = vmul.f32 %v2433_v37, %v973_v17  ;;  %v1286_v10 = vmul.f32 %v2441_v31, %v2457_v28 }
 0x174   : > { %v1071_v55 = vld [vmem:[#allocation2 + $0x32] sm:$0xff]  ;;  %v1039_v27 = vmul.f32 %v2429_v35, %v2437_v50  ;;  %v2450_v42 = vld [vmem:[#allocation2 + $0x4a] sm:$0xff]  ;;  %v2461_v51 = vld [vmem:[#allocation2 + $0x62] sm:$0xff]  ;;  %v1187_v32 = vmul.f32 %v2435_v5, %v2448_v23  ;;  %v1185_v26 = vmul.f32 %v2435_v5, %v2437_v50  ;;  %v1335_v1 = vmul.f32 %v2452_v34, %v2459_v54 }
 0x175   : > { %v1088_v56 = vmul.f32 %v2431_v18, %v1071_v55  ;;  %v972_v63 = vld [vmem:[#allocation2 + $0x20] sm:$0xff]  ;;  %v1236_v40 = vmul.f32 %v2439_v16, %v2450_v42  ;;  %v2472_v0 = vld [vmem:[#allocation2 + $0x38] sm:$0xff]  ;;  %v1384_v46 = vmul.f32 %v2454_v59, %v2461_v51  ;;  %v2486_v45 = vld [vmem:[#allocation2 + $0x50] sm:$0xff]  ;;  %v1234_v47 = vmul.f32 %v2439_v16, %v1071_v55 }
 0x176   : > { %v1055_v19 = vadd.f32 %v1039_v27, %v990_v25  ;;  %v1021_v36 = vld [vmem:[#allocation2 + $0x21] sm:$0xff]  ;;  %v989_v30 = vmul.f32 %v2427_v8, %v972_v63  ;;  %v2474_v39 = vld [vmem:[#allocation2 + $0x39] sm:$0xff]  ;;  %v2488_v22 = vld [vmem:[#allocation2 + $0x51] sm:$0xff]  ;;  %v1137_v11 = vmul.f32 %v2433_v37, %v2472_v0  ;;  %v1285_v41 = vmul.f32 %v2441_v31, %v2486_v45 }
 0x177   : > { %v1070_v43 = vld [vmem:[#allocation2 + $0x22] sm:$0xff]  ;;  %v1038_v61 = vmul.f32 %v2429_v35, %v1021_v36  ;;  %v2484_v20 = vld [vmem:[#allocation2 + $0x3a] sm:$0xff]  ;;  %v1186_v49 = vmul.f32 %v2435_v5, %v2474_v39  ;;  %v2496_v57 = vld [vmem:[#allocation2 + $0x52] sm:$0xff]  ;;  %v993_v52 = vmul.f32 %v2486_v45, %v2427_v8  ;;  %v1042_v2 = vmul.f32 %v2488_v22, %v2429_v35 }
 0x178   : > { %v1104_v6 = vadd.f32 %v1088_v56, %v1055_v19  ;;  %v1087_v60 = vmul.f32 %v2431_v18, %v1070_v43  ;;  %v971_v62 = vld [vmem:[#allocation2 + $0x18] sm:$0xff]  ;;  %v1235_v4 = vmul.f32 %v2439_v16, %v2484_v20  ;;  %v2509_v29 = vld [vmem:[#allocation2 + $0x68] sm:$0xff]  ;;  %v1334_v48 = vmul.f32 %v2452_v34, %v2488_v22 }
 0x179   : > { %v1054_v3 = vadd.f32 %v1038_v61, %v989_v30  ;;  %v1020_v9 = vld [vmem:[#allocation2 + $0x19] sm:$0xff]  ;;  %v988_v44 = vmul.f32 %v2427_v8, %v971_v62  ;;  %v1383_v17 = vmul.f32 %v2454_v59, %v2496_v57  ;;  %v1284_v55 = vmul.f32 %v2441_v31, %v2446_v33 }
 0x17a   : > { %v1069_v21 = vld [vmem:[#allocation2 + $0x1a] sm:$0xff]  ;;  %v1154_v14 = vadd.f32 %v1138_v7, %v1104_v6  ;;  %v1037_v13 = vmul.f32 %v2429_v35, %v1020_v9  ;;  %v1058_v56 = vadd.f32 %v1042_v2, %v993_v52  ;;  %v1091_v19 = vmul.f32 %v2496_v57, %v2431_v18  ;;  %v2519_v7 = vld [vmem:[#allocation2 + $0x69] sm:$0xff] }
 0x17b   : > { %v1103_v38 = vadd.f32 %v1087_v60, %v1054_v3  ;;  %v1086_v12 = vmul.f32 %v2431_v18, %v1069_v21  ;;  %v1333_v36 = vmul.f32 %v2452_v34, %v2448_v23  ;;  %v1382_v43 = vmul.f32 %v2454_v59, %v2450_v42  ;;  %v2531_v60 = vld [vmem:[#allocation2 + $0x81] sm:$0xff] }
 0x17c   : > { %v1203_v53 = vadd.f32 %v1187_v32, %v1154_v14  ;;  %v1053_v24 = vadd.f32 %v1037_v13, %v988_v44  ;;  %v2521_v32 = vld [vmem:[#allocation2 + $0x6a] sm:$0xff]  ;;  %v1141_v30 = vmul.f32 %v2433_v37, %v2509_v29  ;;  %v1107_v3 = vadd.f32 %v1091_v19, %v1058_v56  ;;  %v2539_v14 = vld [vmem:[#allocation2 + $0x82] sm:$0xff] }
 0x17d   : > { %v1153_v58 = vadd.f32 %v1137_v11, %v1103_v38  ;;  %v992_v11 = vmul.f32 %v2446_v33, %v2427_v8  ;;  %v1190_v9 = vmul.f32 %v2435_v5, %v2519_v7  ;;  %v1239_v21 = vmul.f32 %v2439_v16, %v2521_v32 }
 0x17e   : > { %v1252_v25 = vadd.f32 %v1236_v40, %v1203_v53  ;;  %v1102_v27 = vadd.f32 %v1086_v12, %v1053_v24  ;;  %v2529_v40 = vld [vmem:[#allocation2 + $0x80] sm:$0xff]  ;;  %v1157_v33 = vadd.f32 %v1141_v30, %v1107_v3  ;;  %v1090_v53 = vmul.f32 %v2450_v42, %v2431_v18 }
 0x17f   : > { %v1202_v63 = vadd.f32 %v1186_v49, %v1153_v58  ;;  %v1041_v49 = vmul.f32 %v2448_v23, %v2429_v35  ;;  %v1289_v13 = vmul.f32 %v2441_v31, %v2529_v40  ;;  %v1387_v2 = vmul.f32 %v2454_v59, %v2539_v14 }
 0x180   : > { %v1302_v61 = vadd.f32 %v1286_v10, %v1252_v25  ;;  %v1152_v6 = vadd.f32 %v1136_v15, %v1102_v27  ;;  %v2546_v15 = vld [vmem:[%s2951_s5] ss:$0 sm:$0xff]  ;;  %v1140_v25 = vmul.f32 %v2457_v28, %v2433_v37  ;;  %v991_v27 = vmul.f32 %v2472_v0, %v2427_v8  ;;  %v2573_v0 = vld [vmem:[#allocation2 + $0x78] sm:$0xff] }
 0x181   : > { %v1251_v62 = vadd.f32 %v1235_v4, %v1202_v63  ;;  %v1338_v4 = vmul.f32 %v2452_v34, %v2531_v60  ;;  %v1057_v12 = vadd.f32 %v1041_v49, %v992_v11  ;;  %v1040_v19 = vmul.f32 %v2474_v39, %v2429_v35  ;;  %v2575_v11 = vld [vmem:[#allocation2 + $0x79] sm:$0xff] }
 0x182   : > { %v1351_v10 = vadd.f32 %v1335_v1, %v1302_v61  ;;  %v1201_v44 = vadd.f32 %v1185_v26, %v1152_v6  ;;  %v2557_v1 = vld [vmem:[%s2952_s6] ss:$0 sm:$0xff]  ;;  %v1206_v26 = vadd.f32 %v1190_v9, %v1157_v33  ;;  %v1189_v30 = vmul.f32 %v2459_v54, %v2435_v5 }
 0x183   : > { %v1301_v38 = vadd.f32 %v1285_v41, %v1251_v62  ;;  %v1106_v41 = vadd.f32 %v1090_v53, %v1057_v12 }
 0x184   : > { %v1400_v24 = vadd.f32 %v1384_v46, %v1351_v10  ;;  %v1250_v52 = vadd.f32 %v1234_v47, %v1201_v44  ;;  %v1255_v56 = vadd.f32 %v1239_v21, %v1206_v26  ;;  %v1139_v21 = vmul.f32 %v2486_v45, %v2433_v37  ;;  %v2589_v45 = vld [vmem:[#allocation2 + $0x7a] sm:$0xff] }
 0x185   : > { %v1350_v58 = vadd.f32 %v1334_v48, %v1301_v38  ;;  %v1156_v63 = vadd.f32 %v1140_v25, %v1106_v41  ;;  %v1089_v48 = vmul.f32 %v2484_v20, %v2431_v18  ;;  %v1337_v38 = vmul.f32 %v2452_v34, %v2575_v11 }
 0x186   : > { %v1420_v42 = vmul.f32 %v2546_v15, %v1400_v24  ;;  %v1300_v46 = vadd.f32 %v1284_v55, %v1250_v52  ;;  %v1305_v3 = vadd.f32 %v1289_v13, %v1255_v56  ;;  %v1056_v55 = vadd.f32 %v1040_v19, %v991_v27 }
 0x187   : > { %v1399_v47 = vadd.f32 %v1383_v17, %v1350_v58  ;;  %v1205_v9 = vadd.f32 %v1189_v30, %v1156_v63  ;;  %v1238_v17 = vmul.f32 %v2461_v51, %v2439_v16  ;;  %v1288_v13 = vmul.f32 %v2441_v31, %v2573_v0 }
 0x188   : > { %v1440_v61 = vadd.f32 %v2557_v1, %v1420_v42  ;;  %v1349_v6 = vadd.f32 %v1333_v36, %v1300_v46  ;;  %v1354_v10 = vadd.f32 %v1338_v4, %v1305_v3  ;;  %v1105_v44 = vadd.f32 %v1089_v48, %v1056_v55  ;;  %v2601_v42 = vld [vmem:[#allocation2 + $0x90] sm:$0xff] }
 0x189   : > { %v1419_v62 = vmul.f32 %v2546_v15, %v1399_v47  ;;  %v1254_v33 = vadd.f32 %v1238_v17, %v1205_v9  ;;  %v1188_v4 = vmul.f32 %v2488_v22, %v2435_v5  ;;  %v996_v26 = vmul.f32 %v2573_v0, %v2427_v8 }
 0x18a   : > { %v1456_v49 = vmax.f32 %v1440_v61, 0.0  ;;  %v1398_v20 = vadd.f32 %v1382_v43, %v1349_v6  ;;  %v1403_v53 = vadd.f32 %v1387_v2, %v1354_v10  ;;  %v1155_v43 = vadd.f32 %v1139_v21, %v1105_v44 }
 0x18b   : > { %v1439_v36 = vadd.f32 %v2557_v1, %v1419_v62  ;;  %v1304_v52 = vadd.f32 %v1288_v13, %v1254_v33  ;;  %v1045_v58 = vmul.f32 %v2575_v11, %v2429_v35  ;;  %v1237_v2 = vmul.f32 %v2496_v57, %v2439_v16  ;;  %v2611_v57 = vld [vmem:[#allocation2 + $0x91] sm:$0xff] }
 0x18c   : > { %1490 = vrot.lane.b32.xlu1 %v1456_v49, %s1813_s19  ;;  %v1418_v12 = vmul.f32 %v2546_v15, %v1398_v20  ;;  %v1423_v25 = vmul.f32 %v2546_v15, %v1403_v53  ;;  %v1204_v27 = vadd.f32 %v1188_v4, %v1155_v43  ;;  %v1386_v56 = vmul.f32 %v2454_v59, %v2589_v45  ;;  %v2615_v62 = vld [vmem:[#allocation2 + $0x92] sm:$0xff]  ;;  %v2635_v43 = vld [vmem:[#allocation2 + $0xa9] sm:$0xff] }
 0x18d   : > { %v1455_v24 = vmax.f32 %v1439_v36, 0.0  ;;  %v1353_v46 = vadd.f32 %v1337_v38, %v1304_v52  ;;  %v1061_v19 = vadd.f32 %v1045_v58, %v996_v26  ;;  %v1094_v47 = vmul.f32 %v2589_v45, %v2431_v18  ;;  %v2625_v36 = vld [vmem:[#allocation2 + $0xa8] sm:$0xff] }
 0x18e   : > { %v1438_v41 = vadd.f32 %v2557_v1, %v1418_v12  ;;  %v1443_v30 = vadd.f32 %v2557_v1, %v1423_v25  ;;  %v1253_v48 = vadd.f32 %v1237_v2, %v1204_v27  ;;  %v1287_v61 = vmul.f32 %v2441_v31, %v2509_v29  ;;  %v2637_v4 = vld [vmem:[#allocation2 + $0xaa] sm:$0xff] }
 0x18f   : > { %1488 = vrot.lane.b32.xlu0 %v1455_v24, %s1813_s19  ;;  %v1402_v6 = vadd.f32 %v1386_v56, %v1353_v46  ;;  %v1110_v3 = vadd.f32 %v1094_v47, %v1061_v19  ;;  %v1144_v55 = vmul.f32 %v2433_v37, %v2601_v42  ;;  %v1336_v21 = vmul.f32 %v2452_v34, %v2519_v7  ;;  %v2647_v56 = vld [vmem:[#allocation2 + $0x98] sm:$0xff] }
 0x190   : > { %v1454_v63 = vmax.f32 %v1438_v41, 0.0  ;;  %v1459_v9 = vmax.f32 %v1443_v30, 0.0  ;;  %v1303_v17 = vadd.f32 %v1287_v61, %v1253_v48  ;;  %v995_v49 = vmul.f32 %v2509_v29, %v2427_v8  ;;  %v2659_v61 = vld [vmem:[#allocation2 + $0x99] sm:$0xff] }
 0x191   : > { %v1422_v20 = vmul.f32 %v2546_v15, %v1402_v6  ;;  %v1160_v10 = vadd.f32 %v1144_v55, %v1110_v3  ;;  %v1193_v44 = vmul.f32 %v2435_v5, %v2611_v57  ;;  %v1044_v33 = vmul.f32 %v2519_v7, %v2429_v35  ;;  %v2661_v6 = vld [vmem:[#allocation2 + $0x9a] sm:$0xff] }
 0x192   : > { %1486 = vrot.lane.b32.xlu2 %v1454_v63, %s1813_s19  ;;  %v1352_v13 = vadd.f32 %v1336_v21, %v1303_v17  ;;  %v1385_v38 = vmul.f32 %v2454_v59, %v2521_v32  ;;  %v1242_v29 = vmul.f32 %v2439_v16, %v2615_v62  ;;  %v1093_v52 = vmul.f32 %v2521_v32, %v2431_v18 }
 0x193   : > { %v1442_v12 = vadd.f32 %v2557_v1, %v1422_v20  ;;  %v1209_v53 = vadd.f32 %v1193_v44, %v1160_v10  ;;  %v1060_v24 = vadd.f32 %v1044_v33, %v995_v49  ;;  %v1292_v58 = vmul.f32 %v2441_v31, %v2625_v36 }
 0x194   : > { %1496 = vrot.lane.b32.xlu1 %v1459_v9, %s1813_s19  ;;  %v1401_v26 = vadd.f32 %v1385_v38, %v1352_v13  ;;  %v1143_v41 = vmul.f32 %v2529_v40, %v2433_v37  ;;  %v994_v25 = vmul.f32 %v2457_v28, %v2427_v8  ;;  %v1043_v19 = vmul.f32 %v2459_v54, %v2429_v35 }
 0x195   : > { %v1458_v27 = vmax.f32 %v1442_v12, 0.0  ;;  %v1258_v2 = vadd.f32 %v1242_v29, %v1209_v53  ;;  %v1109_v46 = vadd.f32 %v1093_v52, %v1060_v24  ;;  %v1341_v47 = vmul.f32 %v2452_v34, %v2635_v43  ;;  %v2682_v52 = vld [vmem:[#allocation2 + $0xb0] sm:$0xff] }
 0x196   : > { %v1421_v32 = vmul.f32 %v2546_v15, %v1401_v26  ;;  %v1390_v63 = vmul.f32 %v2454_v59, %v2637_v4  ;;  %v1192_v30 = vmul.f32 %v2531_v60, %v2435_v5  ;;  %v1059_v3 = vadd.f32 %v1043_v19, %v994_v25 }
 0x197   : > { %1494 = vrot.lane.b32.xlu0 %v1458_v27, %s1813_s19  ;;  %v1308_v28 = vadd.f32 %v1292_v58, %v1258_v2  ;;  %v1159_v48 = vadd.f32 %v1143_v41, %v1109_v46  ;;  %v1092_v55 = vmul.f32 %v2461_v51, %v2431_v18  ;;  %v1241_v17 = vmul.f32 %v2539_v14, %v2439_v16 }
 0x198   : > { %v1441_v9 = vadd.f32 %v2557_v1, %v1421_v32  ;;  %v1291_v21 = vmul.f32 %v2441_v31, %v2647_v56  ;;  %v1142_v49 = vmul.f32 %v2573_v0, %v2433_v37  ;;  %v999_v33 = vmul.f32 %v2647_v56, %v2427_v8  ;;  %v2694_v32 = vld [vmem:[#allocation2 + $0xb1] sm:$0xff] }
 0x199   : > { %v1357_v20 = vadd.f32 %v1341_v47, %v1308_v28  ;;  %v1208_v10 = vadd.f32 %v1192_v30, %v1159_v48  ;;  %v1108_v44 = vadd.f32 %v1092_v55, %v1059_v3  ;;  %v1340_v51 = vmul.f32 %v2452_v34, %v2659_v61 }
 0x19a   : > { %v1457_v13 = vmax.f32 %v1441_v9, 0.0  ;;  %v1389_v38 = vmul.f32 %v2454_v59, %v2661_v6  ;;  %v1048_v29 = vmul.f32 %v2659_v61, %v2429_v35  ;;  %v1191_v0 = vmul.f32 %v2575_v11, %v2435_v5 }
 0x19b   : > { %v1406_v12 = vadd.f32 %v1390_v63, %v1357_v20  ;;  %v1257_v53 = vadd.f32 %v1241_v17, %v1208_v10  ;;  %v1158_v24 = vadd.f32 %v1142_v49, %v1108_v44  ;;  %v1240_v26 = vmul.f32 %v2589_v45, %v2439_v16  ;;  %v2698_v63 = vld [vmem:[#allocation2 + $0xb2] sm:$0xff]  ;;  %v2707_v17 = vld [vmem:[#allocation2 + $0xc8] sm:$0xff] }
 0x19c   : > { %1492 = vrot.lane.b32.xlu2 %v1457_v13, %s1813_s19  ;;  %v1290_v58 = vmul.f32 %v2441_v31, %v2601_v42  ;;  %v1064_v41 = vadd.f32 %v1048_v29, %v999_v33  ;;  %v1097_v25 = vmul.f32 %v2661_v6, %v2431_v18  ;;  %v1339_v19 = vmul.f32 %v2452_v34, %v2611_v57 }
 0x19d   : > { %v1426_v27 = vmul.f32 %v2546_v15, %v1406_v12  ;;  %v1307_v2 = vadd.f32 %v1291_v21, %v1257_v53  ;;  %v1207_v46 = vadd.f32 %v1191_v0, %v1158_v24  ;;  %v1147_v45 = vmul.f32 %v2433_v37, %v2682_v52 }
 0x19e   : > { %v1113_v47 = vadd.f32 %v1097_v25, %v1064_v41  ;;  %v998_v30 = vmul.f32 %v2601_v42, %v2427_v8  ;;  %v1047_v28 = vmul.f32 %v2611_v57, %v2429_v35  ;;  %v1388_v9 = vmul.f32 %v2454_v59, %v2615_v62 }
 0x19f   : > { %v1446_v48 = vadd.f32 %v2557_v1, %v1426_v27  ;;  %v1356_v3 = vadd.f32 %v1340_v51, %v1307_v2  ;;  %v1256_v55 = vadd.f32 %v1240_v26, %v1207_v46  ;;  %v1196_v49 = vmul.f32 %v2435_v5, %v2694_v32  ;;  %v2715_v51 = vld [vmem:[#allocation2 + $0xc9] sm:$0xff] }
 0x1a0   : > { %v1163_v21 = vadd.f32 %v1147_v45, %v1113_v47  ;;  %v1063_v20 = vadd.f32 %v1047_v28, %v998_v30  ;;  %v1096_v42 = vmul.f32 %v2615_v62, %v2431_v18  ;;  %v1245_v13 = vmul.f32 %v2439_v16, %v2698_v63 }
 0x1a1   : > { %v1462_v10 = vmax.f32 %v1446_v48, 0.0  ;;  %v1405_v44 = vadd.f32 %v1389_v38, %v1356_v3  ;;  %v1306_v33 = vadd.f32 %v1290_v58, %v1256_v55  ;;  %v1295_v12 = vmul.f32 %v2441_v31, %v2707_v17  ;;  %v2723_v38 = vld [vmem:[#allocation2 + $0xca] sm:$0xff]  ;;  %v2742_v55 = vld [vmem:[#allocation2 + $0xc1] sm:$0xff] }
 0x1a2   : > { %v1212_v29 = vadd.f32 %v1196_v49, %v1163_v21  ;;  %v1112_v53 = vadd.f32 %v1096_v42, %v1063_v20  ;;  %v1146_v24 = vmul.f32 %v2625_v36, %v2433_v37  ;;  %v997_v26 = vmul.f32 %v2529_v40, %v2427_v8 }
 0x1a3   : > { %1502 = vrot.lane.b32.xlu1 %v1462_v10, %s1813_s19  ;;  %v1425_v62 = vmul.f32 %v2546_v15, %v1405_v44  ;;  %v1355_v0 = vadd.f32 %v1339_v19, %v1306_v33  ;;  %v1046_v58 = vmul.f32 %v2531_v60, %v2429_v35  ;;  %v1344_v25 = vmul.f32 %v2452_v34, %v2715_v51  ;;  %v2734_v19 = vld [vmem:[#allocation2 + $0xc0] sm:$0xff] }
 0x1a4   : > { %v1261_v41 = vadd.f32 %v1245_v13, %v1212_v29  ;;  %v1162_v27 = vadd.f32 %v1146_v24, %v1112_v53  ;;  %v1195_v2 = vmul.f32 %v2635_v43, %v2435_v5  ;;  %v1095_v40 = vmul.f32 %v2539_v14, %v2431_v18  ;;  %v2749_v44 = vld [vmem:[#allocation2 + $0xc2] sm:$0xff] }
 0x1a5   : > { %v1445_v46 = vadd.f32 %v2557_v1, %v1425_v62  ;;  %v1404_v47 = vadd.f32 %v1388_v9, %v1355_v0  ;;  %v1062_v45 = vadd.f32 %v1046_v58, %v997_v26  ;;  %v1393_v28 = vmul.f32 %v2454_v59, %v2723_v38  ;;  %v2763_v26 = vld [vmem:[#allocation2 + $0xd8] sm:$0xff] }
 0x1a6   : > { %v1311_v30 = vadd.f32 %v1295_v12, %v1261_v41  ;;  %v1211_v48 = vadd.f32 %v1195_v2, %v1162_v27  ;;  %v1244_v3 = vmul.f32 %v2637_v4, %v2439_v16  ;;  %v1145_v20 = vmul.f32 %v2647_v56, %v2433_v37 }
 0x1a7   : > { %v1461_v21 = vmax.f32 %v1445_v46, 0.0  ;;  %v1424_v49 = vmul.f32 %v2546_v15, %v1404_v47  ;;  %v1111_v9 = vadd.f32 %v1095_v40, %v1062_v45  ;;  %v1294_v14 = vmul.f32 %v2441_v31, %v2734_v19  ;;  %v2772_v40 = vld [vmem:[#allocation2 + $0xd9] sm:$0xff] }
 0x1a8   : > { %v1360_v42 = vadd.f32 %v1344_v25, %v1311_v30  ;;  %v1260_v10 = vadd.f32 %v1244_v3, %v1211_v48  ;;  %v1002_v33 = vmul.f32 %v2734_v19, %v2427_v8  ;;  %v1194_v12 = vmul.f32 %v2659_v61, %v2435_v5 }
 0x1a9   : > { %1500 = vrot.lane.b32.xlu0 %v1461_v21, %s1813_s19  ;;  %v1444_v13 = vadd.f32 %v2557_v1, %v1424_v49  ;;  %v1161_v29 = vadd.f32 %v1145_v20, %v1111_v9  ;;  %v1051_v56 = vmul.f32 %v2742_v55, %v2429_v35  ;;  %v1343_v62 = vmul.f32 %v2452_v34, %v2742_v55  ;;  %v2780_v49 = vld [vmem:[#allocation2 + $0xda] sm:$0xff] }
 0x1aa   : > { %v1409_v53 = vadd.f32 %v1393_v28, %v1360_v42  ;;  %v1310_v24 = vadd.f32 %v1294_v14, %v1260_v10  ;;  %v1243_v0 = vmul.f32 %v2661_v6, %v2439_v16  ;;  %v1100_v27 = vmul.f32 %v2749_v44, %v2431_v18 }
 0x1ab   : > { %v1460_v58 = vmax.f32 %v1444_v13, 0.0  ;;  %v1210_v41 = vadd.f32 %v1194_v12, %v1161_v29  ;;  %v1067_v25 = vadd.f32 %v1051_v56, %v1002_v33  ;;  %v1392_v47 = vmul.f32 %v2454_v59, %v2749_v44 }
 0x1ac   : > { %v1429_v2 = vmul.f32 %v2546_v15, %v1409_v53  ;;  %v1359_v46 = vadd.f32 %v1343_v62, %v1310_v24  ;;  %v1293_v45 = vmul.f32 %v2441_v31, %v2682_v52  ;;  %v1150_v28 = vmul.f32 %v2433_v37, %v2763_v26 }
 0x1ad   : > { %1498 = vrot.lane.b32.xlu2 %v1460_v58, %s1813_s19  ;;  %v1259_v6 = vadd.f32 %v1243_v0, %v1210_v41  ;;  %v1116_v30 = vadd.f32 %v1100_v27, %v1067_v25  ;;  %v1001_v48 = vmul.f32 %v2682_v52, %v2427_v8  ;;  %v1050_v9 = vmul.f32 %v2694_v32, %v2429_v35  ;;  %v1281_v52 = vld [vmem:[#allocation2 + $0xf0] sm:$0xff] }
 0x1ae   : > { %v1449_v3 = vadd.f32 %v2557_v1, %v1429_v2  ;;  %v1408_v21 = vadd.f32 %v1392_v47, %v1359_v46  ;;  %v1342_v42 = vmul.f32 %v2452_v34, %v2694_v32  ;;  %v1199_v14 = vmul.f32 %v2435_v5, %v2772_v40  ;;  %v1330_v0 = vld [vmem:[#allocation2 + $0xf1] sm:$0xff] }
 0x1af   : > { %v1309_v20 = vadd.f32 %v1293_v45, %v1259_v6  ;;  %v1166_v10 = vadd.f32 %v1150_v28, %v1116_v30  ;;  %v1066_v29 = vadd.f32 %v1050_v9, %v1001_v48  ;;  %v1099_v12 = vmul.f32 %v2698_v63, %v2431_v18  ;;  %v1379_v47 = vld [vmem:[#allocation2 + $0xf2] sm:$0xff]  ;;  %v1280_v9 = vld [vmem:[#allocation2 + $0xe0] sm:$0xff] }
 0x1b0   : > { %v1465_v33 = vmax.f32 %v1449_v3, 0.0  ;;  %v1428_v13 = vmul.f32 %v2546_v15, %v1408_v21  ;;  %v1391_v53 = vmul.f32 %v2454_v59, %v2698_v63  ;;  %v1248_v62 = vmul.f32 %v2439_v16, %v2780_v49 }
 0x1b1   : > { %v1358_v56 = vadd.f32 %v1342_v42, %v1309_v20  ;;  %v1215_v24 = vadd.f32 %v1199_v14, %v1166_v10  ;;  %v1115_v41 = vadd.f32 %v1099_v12, %v1066_v29  ;;  %v1149_v25 = vmul.f32 %v2707_v17, %v2433_v37  ;;  %v2817_v29 = vld [vmem:[#allocation2 + $0xe1] sm:$0xff] }
 0x1b2   : > { %1508 = vrot.lane.b32.xlu1 %v1465_v33, %s1813_s19  ;;  %v1448_v58 = vadd.f32 %v2557_v1, %v1428_v13  ;;  %v1000_v27 = vmul.f32 %v2625_v36, %v2427_v8  ;;  %v1298_v63 = vmul.f32 %v2441_v31, %v1281_v52  ;;  %v1049_v45 = vmul.f32 %v2635_v43, %v2429_v35 }
 0x1b3   : > { %v1407_v2 = vadd.f32 %v1391_v53, %v1358_v56  ;;  %v1264_v46 = vadd.f32 %v1248_v62, %v1215_v24  ;;  %v1347_v30 = vmul.f32 %v2452_v34, %v1330_v0  ;;  %v1165_v28 = vadd.f32 %v1149_v25, %v1115_v41 }
 0x1b4   : > { %v1464_v6 = vmax.f32 %v1448_v58, 0.0  ;;  %v1198_v48 = vmul.f32 %v2715_v51, %v2435_v5  ;;  %v1065_v36 = vadd.f32 %v1049_v45, %v1000_v27  ;;  %v1098_v20 = vmul.f32 %v2637_v4, %v2431_v18  ;;  %v1378_v58 = vld [vmem:[#allocation2 + $0xe2] sm:$0xff] }
 0x1b5   : > { %v1427_v3 = vmul.f32 %v2546_v15, %v1407_v2  ;;  %v1314_v21 = vadd.f32 %v1298_v63, %v1264_v46  ;;  %v1396_v42 = vmul.f32 %v2454_v59, %v1379_v47  ;;  %v1247_v14 = vmul.f32 %v2723_v38, %v2439_v16 }
 0x1b6   : > { %1506 = vrot.lane.b32.xlu0 %v1464_v6, %s1813_s19  ;;  %v1214_v10 = vadd.f32 %v1198_v48, %v1165_v28  ;;  %v1148_v33 = vmul.f32 %v2734_v19, %v2433_v37  ;;  %v1114_v12 = vadd.f32 %v1098_v20, %v1065_v36  ;;  %v1003_v4 = vmul.f32 %v2707_v17, %v2427_v8  ;;  %v1282_v20 = vld [vmem:[#allocation2 + $0xf8] sm:$0xff] }
 0x1b7   : > { %v1447_v13 = vadd.f32 %v2557_v1, %v1427_v3  ;;  %v1363_v52 = vadd.f32 %v1347_v30, %v1314_v21  ;;  %v1297_v53 = vmul.f32 %v2441_v31, %v1280_v9  ;;  %v1052_v24 = vmul.f32 %v2715_v51, %v2429_v35 }
 0x1b8   : > { %v1263_v56 = vadd.f32 %v1247_v14, %v1214_v10  ;;  %v1164_v41 = vadd.f32 %v1148_v33, %v1114_v12  ;;  %v1197_v19 = vmul.f32 %v2742_v55, %v2435_v5  ;;  %v1346_v27 = vmul.f32 %v2452_v34, %v2817_v29  ;;  %v1331_v14 = vld [vmem:[#allocation2 + $0xf9] sm:$0xff] }
 0x1b9   : > { %v1463_v62 = vmax.f32 %v1447_v13, 0.0  ;;  %v1412_v0 = vadd.f32 %v1396_v42, %v1363_v52  ;;  %v1068_v2 = vadd.f32 %v1052_v24, %v1003_v4  ;;  %v1101_v8 = vmul.f32 %v2723_v38, %v2431_v18  ;;  %v1380_v12 = vld [vmem:[#allocation2 + $0xfa] sm:$0xff] }
 0x1ba   : > { %v1313_v25 = vadd.f32 %v1297_v53, %v1263_v56  ;;  %v1213_v35 = vadd.f32 %v1197_v19, %v1164_v41  ;;  %v1246_v46 = vmul.f32 %v2749_v44, %v2439_v16  ;;  %v1395_v47 = vmul.f32 %v2454_v59, %v1378_v58 }
 0x1bb   : > { %1504 = vrot.lane.b32.xlu2 %v1463_v62, %s1813_s19  ;;  %v1432_v17 = vmul.f32 %v2546_v15, %v1412_v0  ;;  %v1117_v45 = vadd.f32 %v1101_v8, %v1068_v2  ;;  %v1151_v6 = vmul.f32 %v1280_v9, %v2433_v37  ;;  %v1296_v18 = vmul.f32 %v2441_v31, %v2763_v26 }
 0x1bc   : > { %v1362_v63 = vadd.f32 %v1346_v27, %v1313_v25  ;;  %v1262_v28 = vadd.f32 %v1246_v46, %v1213_v35  ;;  %v1200_v3 = vmul.f32 %v2817_v29, %v2435_v5  ;;  %v1345_v44 = vmul.f32 %v2452_v34, %v2772_v40 }
 0x1bd   : > { %v1452_v30 = vadd.f32 %v2557_v1, %v1432_v17  ;;  %v1167_v48 = vadd.f32 %v1151_v6, %v1117_v45  ;;  %v1249_v9 = vmul.f32 %v1378_v58, %v2439_v16  ;;  %v1394_v26 = vmul.f32 %v2454_v59, %v2780_v49 }
 0x1be   : > { %v1411_v38 = vadd.f32 %v1395_v47, %v1362_v63  ;;  %v1312_v36 = vadd.f32 %v1296_v18, %v1262_v28  ;;  %v1299_v13 = vmul.f32 %v2441_v31, %v1282_v20  ;;  %v1348_v16 = vmul.f32 %v2452_v34, %v1331_v14 }
 0x1bf   : > { %v1468_v21 = vmax.f32 %v1452_v30, 0.0  ;;  %v1216_v37 = vadd.f32 %v1200_v3, %v1167_v48  ;;  %v1397_v24 = vmul.f32 %v2454_v59, %v1380_v12 }
 0x1c0   : > { %v1431_v42 = vmul.f32 %v2546_v15, %v1411_v38  ;;  %v1361_v10 = vadd.f32 %v1345_v44, %v1312_v36 }
 0x1c1   : > { %1514 = vrot.lane.b32.xlu1 %v1468_v21, %s1813_s19  ;;  %v1265_v33 = vadd.f32 %v1249_v9, %v1216_v37 }
 0x1c2   : > { %v1451_v5 = vadd.f32 %v2557_v1, %v1431_v42  ;;  %v1410_v52 = vadd.f32 %v1394_v26, %v1361_v10 }
 0x1c3   : > { %v1315_v56 = vadd.f32 %v1299_v13, %v1265_v33 }
 0x1c4   : > { %v1467_v4 = vmax.f32 %v1451_v5, 0.0  ;;  %v1430_v53 = vmul.f32 %v2546_v15, %v1410_v52 }
 0x1c5   : > { %v1364_v49 = vadd.f32 %v1348_v16, %v1315_v56 }
 0x1c6   : > { %1512 = vrot.lane.b32.xlu0 %v1467_v4, %s1813_s19  ;;  %v1450_v62 = vadd.f32 %v2557_v1, %v1430_v53 }
 0x1c7   : > { %v1413_v0 = vadd.f32 %v1397_v24, %v1364_v49 }
 0x1c8   : > { %v1466_v31 = vmax.f32 %v1450_v62, 0.0 }
 0x1c9   : > { %v1433_v58 = vmul.f32 %v2546_v15, %v1413_v0 }
 0x1ca   : > { %1510 = vrot.lane.b32.xlu2 %v1466_v31, %s1813_s19 }
 0x1cb   : > { %v1453_v41 = vadd.f32 %v2557_v1, %v1433_v58 }
 0x1cd   : > { %v1469_v19 = vmax.f32 %v1453_v41, 0.0 }
 0x1d2   : > { %1516 = vrot.lane.b32.xlu2 %v1469_v19, %s1813_s19 }
 0x1ec   : > { %v1487_v34 = vpop.permute.xlu2 %1486 }
 0x1ed   : > { %v1534_v59 = vsel %vm312_vm0, %v2437_v50, %v1487_v34 }
 0x1ee   : > { %1551 = vst.msk [vmem:[%s2865_s10] sm:$0xff] %vm1550_vm2, %v1534_v59 }
 0x1f6   : > { %v1493_v15 = vpop.permute.xlu2 %1492 }
 0x1f7   : > { %v1537_v1 = vsel %vm312_vm0, %v2488_v22, %v1493_v15 }
 0x1f8   : > { %1554 = vst.msk [vmem:[%s2865_s10 + $0x18] sm:$0xff] %vm1550_vm2, %v1537_v1 }
 0x1fe   : > { %v1491_v25 = vpop.permute.xlu1 %1490 }
 0x1ff   : > { %v1536_v27 = vsel %vm312_vm0, %v2448_v23, %v1491_v25 }
 0x200   : > { %1553 = vst.msk [vmem:[%s2865_s10 + $0x10] sm:$0xff] %vm1550_vm2, %v1536_v27 }
 0x201   : > { %v1489_v2 = vpop.permute.xlu0 %1488 }
 0x202   : > { %v1535_v50 = vsel %vm312_vm0, %v2474_v39, %v1489_v2 }
 0x203   : > { %1552 = vst.msk [vmem:[%s2865_s10 + $0x8] sm:$0xff] %vm1550_vm2, %v1535_v50 }
 0x206   : > { %v1497_v8 = vpop.permute.xlu1 %1496 }
 0x207   : > { %v1539_v22 = vsel %vm312_vm0, %v2519_v7, %v1497_v8  ;;  %v1499_v17 = vpop.permute.xlu2 %1498 }
 0x208   : > { %1556 = vst.msk [vmem:[%s2865_s10 + $0x28] sm:$0xff] %vm1550_vm2, %v1539_v22  ;;  %v1540_v23 = vsel %vm312_vm0, %v2575_v11, %v1499_v17 }
 0x209   : > { %1557 = vst.msk [vmem:[%s2865_s10 + $0x30] sm:$0xff] %vm1550_vm2, %v1540_v23  ;;  %v1495_v35 = vpop.permute.xlu0 %1494 }
 0x20a   : > { %v1538_v39 = vsel %vm312_vm0, %v2459_v54, %v1495_v35 }
 0x20b   : > { %1555 = vst.msk [vmem:[%s2865_s10 + $0x20] sm:$0xff] %vm1550_vm2, %v1538_v39 }
 0x215   : > { %v1505_v46 = vpop.permute.xlu2 %1504  ;;  %v1503_v63 = vpop.permute.xlu1 %1502 }
 0x216   : > { %v1543_v7 = vsel %vm312_vm0, %v2659_v61, %v1505_v46  ;;  %v1542_v47 = vsel %vm312_vm0, %v2611_v57, %v1503_v63 }
 0x217   : > { %1560 = vst.msk [vmem:[%s2865_s10 + $0x48] sm:$0xff] %vm1550_vm2, %v1543_v7 }
 0x218   : > { %1559 = vst.msk [vmem:[%s2865_s10 + $0x40] sm:$0xff] %vm1550_vm2, %v1542_v47 }
 0x21b   : > { %v1501_v11 = vpop.permute.xlu0 %1500 }
 0x21c   : > { %v1541_v54 = vsel %vm312_vm0, %v2531_v60, %v1501_v11 }
 0x21d   : > { %1558 = vst.msk [vmem:[%s2865_s10 + $0x38] sm:$0xff] %vm1550_vm2, %v1541_v54 }
 0x224   : > { %v1509_v45 = vpop.permute.xlu1 %1508  ;;  %v1511_v6 = vpop.permute.xlu2 %1510 }
 0x225   : > { %v1545_v61 = vsel %vm312_vm0, %v2694_v32, %v1509_v45  ;;  %v1546_v57 = vsel %vm312_vm0, %v2742_v55, %v1511_v6 }
 0x226   : > { %1562 = vst.msk [vmem:[%s2865_s10 + $0x58] sm:$0xff] %vm1550_vm2, %v1545_v61 }
 0x227   : > { %1563 = vst.msk [vmem:[%s2865_s10 + $0x60] sm:$0xff] %vm1550_vm2, %v1546_v57 }
 0x228   : > { %v1507_v30 = vpop.permute.xlu0 %1506 }
 0x229   : > { %v1544_v60 = vsel %vm312_vm0, %v2635_v43, %v1507_v30 }
 0x22a   : > { %1561 = vst.msk [vmem:[%s2865_s10 + $0x50] sm:$0xff] %vm1550_vm2, %v1544_v60 }
 0x22c   : > { %v1517_v28 = vpop.permute.xlu2 %1516 }
 0x22d   : > { %v1549_v18 = vsel %vm312_vm0, %v2817_v29, %v1517_v28 }
 0x22e   : > { %1566 = vst.msk [vmem:[%s2865_s10 + $0x78] sm:$0xff] %vm1550_vm2, %v1549_v18 }
 0x233   : > { %v1515_v32 = vpop.permute.xlu1 %1514 }
 0x234   : > { %v1548_v55 = vsel %vm312_vm0, %v2772_v40, %v1515_v32 }
 0x235   : > { %1565 = vst.msk [vmem:[%s2865_s10 + $0x70] sm:$0xff] %vm1550_vm2, %v1548_v55 }
 0x238   : > { %v1513_v38 = vpop.permute.xlu0 %1512 }
 0x239   : > { %v1547_v48 = vsel %vm312_vm0, %v2715_v51, %v1513_v38 }
 0x23a   : > { %1564 = vst.msk [vmem:[%s2865_s10 + $0x68] sm:$0xff] %vm1550_vm2, %v1547_v48 }
 0x23b PF: > { %s17_s28 = sadd.s32 1, %s1806_s28   ;;  %s2954_s24 = smov %s1798_s26 }
 0x23c   : > { %p14_p9 = scmp.ge.s32.totalorder %s17_s28, 6   ;;  %s2955_s25 = smov %s1802_s27 }
 0x23d   : > { %s2956_s26 = smov %s2959_s29  ;;  %s2957_s27 = smov %s2963_s30 }
 0x23e   :  { %16 = sbr.rel (!%p14_p9) target bundleno = 3 (0x3), region = 83 }

</bundles_post_ra>
